<compile_context>
chip_gen: v5e
topology: v5e:2x2
jax: 0.10.0
libtpu: 0.0.40
codegen_flags: <defaults>
</compile_context>

<pallas_src>
import math

import numpy as np
import jax
import jax.numpy as jnp
from jax.experimental import pallas as pl
from jax.experimental.pallas import tpu as pltpu  # noqa: F401  (kept for TPU-specific tuning hooks)

# ---------------- small CLIP-ViT config ----------------
BATCH = 2
IN_CH = 3            # RGB, as CLIP expects
IMG = 16             # input resolution
PATCH = 8            # patch size -> (16/8)^2 = 4 patches
WIDTH = 32           # transformer width
HEADS = 4
HEAD_DIM = WIDTH // HEADS
LAYERS = 2
OUT_DIM = 16         # image embedding dim
N_TOK = (IMG // PATCH) ** 2
SEQ = 1 + N_TOK      # cls token + patches = 5
DTYPE = jnp.float32

CPP = IN_CH * PATCH * PATCH   # 192 im2col features per patch
POS_PAD = 8                   # SEQ(=5) position one-hot columns, padded to 8
CPP_AUG = CPP + POS_PAD       # 200 columns fed to the fused patch-embed matmul


def _r8(n):
    return (n + 7) // 8 * 8


# ---- per-layer weight slab layout: (LAYERS, LSLAB_ROWS, 4*WIDTH), 8-aligned row offsets ----
_L_INW = 0                               # (W, 3W)   qkv projection (Q block pre-scaled)
_L_INB = _r8(_L_INW + WIDTH)             # (1, 3W)
_L_OUTW = _r8(_L_INB + 1)                # (W, W)
_L_OUTB = _r8(_L_OUTW + WIDTH)           # (1, W)
_L_FCW = _r8(_L_OUTB + 1)                # (W, 4W)
_L_FCB = _r8(_L_FCW + WIDTH)             # (1, 4W)
_L_CPW = _r8(_L_FCB + 1)                 # (4W, W)
_L_CPB = _r8(_L_CPW + 4 * WIDTH)         # (1, W)
_L_LN1G = _r8(_L_CPB + 1)
_L_LN1B = _L_LN1G + 1
_L_LN2G = _L_LN1G + 2
_L_LN2B = _L_LN1G + 3
LSLAB_ROWS = _r8(_L_LN2B + 1)            # 264
LSLAB_COLS = 4 * WIDTH                   # 128

# ---- globals slab layout: (GSLAB_ROWS, WIDTH) ----
_G_WP = 0                                # (CPP_AUG, W): [conv_w ; cls+pos rows ; zero pad]
_G_LNPRE_G = _G_WP + CPP_AUG
_G_LNPRE_B = _G_LNPRE_G + 1
_G_LNPOST_G = _G_LNPRE_G + 2
_G_LNPOST_B = _G_LNPRE_G + 3
_G_PROJ = _r8(_G_LNPOST_B + 1)           # (W, OUT_DIM)
GSLAB_ROWS = _r8(_G_PROJ + WIDTH)        # 240
GSLAB_COLS = WIDTH


def _const_layout(bs):
    """Row layout of the attention-constants slab for a folded batch of `bs` tokens."""
    f = HEADS * bs
    o_rep = 0                     # (f, bs)   head-replication 0/1 matrix
    o_hm = _r8(o_rep + f)         # (f, W)    head column mask
    o_am = _r8(o_hm + f)          # (bs, f)   additive cross-image mask (0 / -1e9)
    o_ss = _r8(o_am + bs)         # (f, f)    per-head-segment summing 0/1 matrix
    rows = _r8(o_ss + f)
    cols = max(f, WIDTH, bs)
    return f, o_rep, o_hm, o_am, o_ss, rows, cols


# ---------------- the single fused Pallas kernel ----------------
def _encode_image_kernel(patches_ref, lslab_ref, gslab_ref, consts_ref, out_ref):
    f32 = jnp.float32
    bs = patches_ref.shape[0]             # B * SEQ  (static)
    bn = bs // SEQ
    f, o_rep, o_hm, o_am, o_ss, _, _ = _const_layout(bs)

    def ln(x, g, b):
        m = jnp.mean(x, axis=-1, keepdims=True)
        v = jnp.mean((x - m) ** 2, axis=-1, keepdims=True)
        return (x - m) * jax.lax.rsqrt(v + 1e-5) * g + b

    # attention constants (0/1 matrices + additive mask), loaded once, reused every layer
    rep = consts_ref[o_rep:o_rep + f, 0:bs]           # (f, bs)
    headmask = consts_ref[o_hm:o_hm + f, 0:WIDTH]     # (f, W)
    addmask = consts_ref[o_am:o_am + bs, 0:f]         # (bs, f)
    segsum = consts_ref[o_ss:o_ss + f, 0:f]           # (f, f)

    # --- patch-embed conv + cls token + positional embedding: ONE matmul ---
    wpa = gslab_ref[_G_WP:_G_WP + CPP_AUG, 0:WIDTH]   # [conv_w ; cls+pos ; pad]
    x = jnp.dot(patches_ref[...], wpa, preferred_element_type=f32)        # (bs, W)

    # --- ln_pre ---
    x = ln(x, gslab_ref[_G_LNPRE_G:_G_LNPRE_G + 1, 0:WIDTH],
           gslab_ref[_G_LNPRE_B:_G_LNPRE_B + 1, 0:WIDTH])

    # --- transformer (ResidualAttentionBlocks), statically unrolled ---
    for l in range(LAYERS):
        # x = x + attn(ln_1(x))   -- block-diagonal multi-head attention, no per-head loop
        h = ln(x, lslab_ref[l, _L_LN1G:_L_LN1G + 1, 0:WIDTH],
               lslab_ref[l, _L_LN1B:_L_LN1B + 1, 0:WIDTH])
        qkv = jnp.dot(h, lslab_ref[l, _L_INW:_L_INW + WIDTH, 0:3 * WIDTH],
                      preferred_element_type=f32) \
            + lslab_ref[l, _L_INB:_L_INB + 1, 0:3 * WIDTH]                # (bs, 3W), Q pre-scaled
        q = qkv[:, 0:WIDTH]                                               # (bs, W)
        kv_rep = jnp.dot(rep, qkv[:, WIDTH:3 * WIDTH],
                         preferred_element_type=f32)                      # (f, 2W) head-replicated
        k_exp = kv_rep[:, 0:WIDTH] * headmask                             # (f, W) head-blocked K
        v_exp = kv_rep[:, WIDTH:2 * WIDTH] * headmask                     # (f, W) head-blocked V
        s = jax.lax.dot_general(q, k_exp, (((1,), (1,)), ((), ())),
                                preferred_element_type=f32) + addmask     # (bs, f) scores
        e = jnp.exp(s - jnp.max(s, axis=-1, keepdims=True))               # row max: shift-invariant
        denom = jnp.dot(e, segsum, preferred_element_type=f32)            # per-head segment sums
        p = e * pl.reciprocal(denom, approx=True)
        attn = jnp.dot(p, v_exp, preferred_element_type=f32)              # (bs, W), heads concat'd
        attn = jnp.dot(attn, lslab_ref[l, _L_OUTW:_L_OUTW + WIDTH, 0:WIDTH],
                       preferred_element_type=f32) \
             + lslab_ref[l, _L_OUTB:_L_OUTB + 1, 0:WIDTH]
        x = x + attn

        # x = x + mlp(ln_2(x));  mlp = Linear -> QuickGELU -> Linear
        h = ln(x, lslab_ref[l, _L_LN2G:_L_LN2G + 1, 0:WIDTH],
               lslab_ref[l, _L_LN2B:_L_LN2B + 1, 0:WIDTH])
        hfc = jnp.dot(h, lslab_ref[l, _L_FCW:_L_FCW + WIDTH, 0:4 * WIDTH],
                      preferred_element_type=f32) \
            + lslab_ref[l, _L_FCB:_L_FCB + 1, 0:4 * WIDTH]
        hfc = hfc * jax.nn.sigmoid(1.702 * hfc)                           # CLIP QuickGELU
        x = x + jnp.dot(hfc, lslab_ref[l, _L_CPW:_L_CPW + 4 * WIDTH, 0:WIDTH],
                        preferred_element_type=f32) \
              + lslab_ref[l, _L_CPB:_L_CPB + 1, 0:WIDTH]

    # --- ln_post on class tokens + image projection, one contiguous (B, OUT_DIM) store ---
    cls = jnp.concatenate([x[b * SEQ:b * SEQ + 1, :] for b in range(bn)], axis=0)   # (bn, W)
    cls = ln(cls, gslab_ref[_G_LNPOST_G:_G_LNPOST_G + 1, 0:WIDTH],
             gslab_ref[_G_LNPOST_B:_G_LNPOST_B + 1, 0:WIDTH])
    y = jnp.dot(cls, gslab_ref[_G_PROJ:_G_PROJ + WIDTH, 0:OUT_DIM],
                preferred_element_type=f32)                               # (bn, OUT_DIM)
    out_ref[...] = y.astype(out_ref.dtype)


# ---------------- attention constants (built host-side; depend only on static shapes) --------
def _attn_consts(bn):
    bs = bn * SEQ
    f, o_rep, o_hm, o_am, o_ss, rows, cols = _const_layout(bs)
    c = np.zeros((rows, cols), np.float32)
    j = np.arange(f)
    # head-replication: flat row h*bs + t selects token t
    c[o_rep:o_rep + f, 0:bs] = (j[:, None] % bs == np.arange(bs)[None, :]).astype(np.float32)
    # head column mask: flat-row block h keeps only head h's feature columns
    c[o_hm:o_hm + f, 0:WIDTH] = ((j[:, None] // bs) ==
                                 (np.arange(WIDTH)[None, :] // HEAD_DIM)).astype(np.float32)
    # additive mask: a query row may only attend to keys of the same image in the folded batch
    same = (np.arange(bs)[:, None] // SEQ) == ((j[None, :] % bs) // SEQ)
    c[o_am:o_am + bs, 0:f] = np.where(same, 0.0, -1e9).astype(np.float32)
    # per-head-segment summing matrix (broadcasts the softmax denominator across the segment)
    c[o_ss:o_ss + f, 0:f] = ((j[:, None] // bs) == (j[None, :] // bs)).astype(np.float32)
    return jnp.asarray(c)


# ---------------- wrapper: model.encode_image(image) ----------------
def encode_image(packed, image):
    B, C, H, W_img = image.shape
    gh, gw = H // PATCH, W_img // PATCH
    n_tok = gh * gw
    assert n_tok + 1 == SEQ and C * PATCH * PATCH == CPP

    # im2col of the NCHW image (pure layout prep), plus an all-zero cls row and a position
    # one-hot block so that cls+pos assembly happens inside the single patch-embed matmul.
    patches = image.reshape(B, C, gh, PATCH, gw, PATCH)
    patches = patches.transpose(0, 2, 4, 1, 3, 5).reshape(B, n_tok, CPP).astype(jnp.float32)
    tok = jnp.concatenate([jnp.zeros((B, 1, CPP), jnp.float32), patches], axis=1)   # (B, SEQ, CPP)
    pos = jnp.broadcast_to(jnp.eye(SEQ, POS_PAD, dtype=jnp.float32)[None], (B, SEQ, POS_PAD))
    patches_aug = jnp.concatenate([tok, pos], axis=-1).reshape(B * SEQ, CPP_AUG)

    consts = _attn_consts(B)

    # Single invocation, no grid: all inputs become full VMEM-resident blocks (4 DMAs total).
    out = pl.pallas_call(
        _encode_image_kernel,
        out_shape=jax.ShapeDtypeStruct((B, OUT_DIM), jnp.float32),
    )(patches_aug, packed["lslab"], packed["gslab"], consts)
    return out


# ---------------- parameters (deterministic synthetic init, PyTorch-like structure) ----------
def init_params(key):
    ks = jax.random.split(key, 8 + LAYERS)

    def nrm(k, shape, scale=0.02):
        return (scale * jax.random.normal(k, shape)).astype(DTYPE)

    params = {
        "conv1_w": nrm(ks[0], (WIDTH, IN_CH, PATCH, PATCH)),     # conv, bias=False in CLIP
        "class_embedding": nrm(ks[1], (WIDTH,), WIDTH ** -0.5),
        "positional_embedding": nrm(ks[2], (SEQ, WIDTH), 0.01),
        "ln_pre_g": jnp.ones((WIDTH,), DTYPE),
        "ln_pre_b": jnp.zeros((WIDTH,), DTYPE),
        "ln_post_g": jnp.ones((WIDTH,), DTYPE),
        "ln_post_b": jnp.zeros((WIDTH,), DTYPE),
        "proj": nrm(ks[3], (WIDTH, OUT_DIM), WIDTH ** -0.5),
        "layers": [],
    }
    for l in range(LAYERS):
        lk = jax.random.split(ks[8 + l], 4)
        params["layers"].append({
            "ln1_g": jnp.ones((WIDTH,), DTYPE), "ln1_b": jnp.zeros((WIDTH,), DTYPE),
            "in_proj_w": nrm(lk[0], (WIDTH, 3 * WIDTH)),     # stored [in, out]
            "in_proj_b": jnp.zeros((3 * WIDTH,), DTYPE),
            "out_proj_w": nrm(lk[1], (WIDTH, WIDTH)),
            "out_proj_b": jnp.zeros((WIDTH,), DTYPE),
            "ln2_g": jnp.ones((WIDTH,), DTYPE), "ln2_b": jnp.zeros((WIDTH,), DTYPE),
            "fc_w": nrm(lk[2], (WIDTH, 4 * WIDTH)),
            "fc_b": jnp.zeros((4 * WIDTH,), DTYPE),
            "cproj_w": nrm(lk[3], (4 * WIDTH, WIDTH)),
            "cproj_b": jnp.zeros((WIDTH,), DTYPE),
        })
    return params


def _pack_params(params):
    """One-time repack into two weight slabs; fold attention scale into the Q projection."""
    scale = 1.0 / math.sqrt(HEAD_DIM)

    def f32(a):
        return np.asarray(a, np.float32)

    # globals slab: [patch-embed weight ; cls+pos rows ; ln_pre ; ln_post ; proj]
    g = np.zeros((GSLAB_ROWS, GSLAB_COLS), np.float32)
    g[_G_WP:_G_WP + CPP, :] = f32(params["conv1_w"]).reshape(WIDTH, CPP).T
    clspos = f32(params["positional_embedding"]).copy()
    clspos[0] += f32(params["class_embedding"])
    g[_G_WP + CPP:_G_WP + CPP + SEQ, :] = clspos
    g[_G_LNPRE_G, :] = f32(params["ln_pre_g"])
    g[_G_LNPRE_B, :] = f32(params["ln_pre_b"])
    g[_G_LNPOST_G, :] = f32(params["ln_post_g"])
    g[_G_LNPOST_B, :] = f32(params["ln_post_b"])
    g[_G_PROJ:_G_PROJ + WIDTH, 0:OUT_DIM] = f32(params["proj"])

    # per-layer slab
    ls = np.zeros((LAYERS, LSLAB_ROWS, LSLAB_COLS), np.float32)
    for l, lp in enumerate(params["layers"]):
        inw = f32(lp["in_proj_w"]).copy()
        inb = f32(lp["in_proj_b"]).copy()
        inw[:, :WIDTH] *= scale          # fold 1/sqrt(head_dim) into Q projection
        inb[:WIDTH] *= scale
        ls[l, _L_INW:_L_INW + WIDTH, 0:3 * WIDTH] = inw
        ls[l, _L_INB, 0:3 * WIDTH] = inb
        ls[l, _L_OUTW:_L_OUTW + WIDTH, 0:WIDTH] = f32(lp["out_proj_w"])
        ls[l, _L_OUTB, 0:WIDTH] = f32(lp["out_proj_b"])
        ls[l, _L_FCW:_L_FCW + WIDTH, 0:4 * WIDTH] = f32(lp["fc_w"])
        ls[l, _L_FCB, 0:4 * WIDTH] = f32(lp["fc_b"])
        ls[l, _L_CPW:_L_CPW + 4 * WIDTH, 0:WIDTH] = f32(lp["cproj_w"])
        ls[l, _L_CPB, 0:WIDTH] = f32(lp["cproj_b"])
        ls[l, _L_LN1G, 0:WIDTH] = f32(lp["ln1_g"])
        ls[l, _L_LN1B, 0:WIDTH] = f32(lp["ln1_b"])
        ls[l, _L_LN2G, 0:WIDTH] = f32(lp["ln2_g"])
        ls[l, _L_LN2B, 0:WIDTH] = f32(lp["ln2_b"])

    return {"gslab": jnp.asarray(g), "lslab": jnp.asarray(ls)}


# ---------------- ImageCLIP wrapper (matches the PyTorch module) ----------------
class ImageCLIP:
    def __init__(self, params):
        self.packed = _pack_params(params)
        self._fwd = jax.jit(encode_image)

    def __call__(self, image):
        return self._fwd(self.packed, image)


if __name__ == "__main__":
    key = jax.random.PRNGKey(0)
    pkey, ikey = jax.random.split(key)
    params = init_params(pkey)
    image = jax.random.normal(ikey, (BATCH, IN_CH, IMG, IMG), DTYPE)   # NCHW like PyTorch

    model = ImageCLIP(params)
    out = model(image)
    out = jax.block_until_ready(out)

    assert out.shape == (BATCH, OUT_DIM), out.shape
    assert bool(jnp.all(jnp.isfinite(out)))
    print("KERNEL_OK")
</pallas_src>

<mosaic_0001>
module attributes {stable_mosaic.version = 11 : i64} {
  func.func @_encode_image_kernel(%arg0: memref<10x200xf32, #tpu.memory_space<vmem>>, %arg1: memref<2x264x128xf32, #tpu.memory_space<vmem>>, %arg2: memref<240x32xf32, #tpu.memory_space<vmem>>, %arg3: memref<136x40xf32, #tpu.memory_space<vmem>>, %arg4: memref<2x16xf32, #tpu.memory_space<vmem>>) attributes {dimension_semantics = [], scalar_prefetch = 0 : i64, scratch_operands = 0 : i64, tpu.core_type = #tpu.core_type<tc>} {
    %c0 = arith.constant 0 : index
    %c0_0 = arith.constant 0 : index
    %0 = vector.load %arg3[%c0, %c0_0] : memref<136x40xf32, #tpu.memory_space<vmem>>, vector<40x10xf32>
    %c40 = arith.constant 40 : index
    %c0_1 = arith.constant 0 : index
    %1 = vector.load %arg3[%c40, %c0_1] : memref<136x40xf32, #tpu.memory_space<vmem>>, vector<40x32xf32>
    %c80 = arith.constant 80 : index
    %c0_2 = arith.constant 0 : index
    %2 = vector.load %arg3[%c80, %c0_2] : memref<136x40xf32, #tpu.memory_space<vmem>>, vector<10x40xf32>
    %c96 = arith.constant 96 : index
    %c0_3 = arith.constant 0 : index
    %3 = vector.load %arg3[%c96, %c0_3] : memref<136x40xf32, #tpu.memory_space<vmem>>, vector<40x40xf32>
    %c0_4 = arith.constant 0 : index
    %c0_5 = arith.constant 0 : index
    %4 = vector.load %arg2[%c0_4, %c0_5] : memref<240x32xf32, #tpu.memory_space<vmem>>, vector<200x32xf32>
    %c0_6 = arith.constant 0 : index
    %c0_7 = arith.constant 0 : index
    %5 = vector.load %arg0[%c0_6, %c0_7] : memref<10x200xf32, #tpu.memory_space<vmem>>, vector<10x200xf32>
    %cst = arith.constant dense<0.000000e+00> : vector<10x32xf32>
    %6 = tpu.matmul %5, %4, %cst {dimension_numbers = #tpu.dot_dimension_numbers<[1], [0], [0], [1], [0, 0, 1, 1], [], []>} : vector<10x200xf32>, vector<200x32xf32>, vector<10x32xf32> -> vector<10x32xf32>
    %c200 = arith.constant 200 : index
    %c0_8 = arith.constant 0 : index
    %7 = vector.load %arg2[%c200, %c0_8] : memref<240x32xf32, #tpu.memory_space<vmem>>, vector<1x32xf32>
    %c201 = arith.constant 201 : index
    %c0_9 = arith.constant 0 : index
    %8 = vector.load %arg2[%c201, %c0_9] : memref<240x32xf32, #tpu.memory_space<vmem>>, vector<1x32xf32>
    %cst_10 = arith.constant dense<0.000000e+00> : vector<10xf32>
    %9 = vector.multi_reduction <add>, %6, %cst_10 [1] : vector<10x32xf32> to vector<10xf32>
    %10 = vector.shape_cast %9 : vector<10xf32> to vector<10x1xf32>
    %cst_11 = arith.constant 3.200000e+01 : f32
    %11 = vector.broadcast %cst_11 : f32 to vector<10x1xf32>
    %12 = arith.divf %10, %11 : vector<10x1xf32>
    %13 = vector.broadcast %12 : vector<10x1xf32> to vector<10x32xf32>
    %14 = arith.subf %6, %13 : vector<10x32xf32>
    %15 = arith.mulf %14, %14 : vector<10x32xf32>
    %cst_12 = arith.constant dense<0.000000e+00> : vector<10xf32>
    %16 = vector.multi_reduction <add>, %15, %cst_12 [1] : vector<10x32xf32> to vector<10xf32>
    %17 = vector.shape_cast %16 : vector<10xf32> to vector<10x1xf32>
    %cst_13 = arith.constant 3.200000e+01 : f32
    %18 = vector.broadcast %cst_13 : f32 to vector<10x1xf32>
    %19 = arith.divf %17, %18 : vector<10x1xf32>
    %20 = vector.broadcast %12 : vector<10x1xf32> to vector<10x32xf32>
    %21 = arith.subf %6, %20 : vector<10x32xf32>
    %cst_14 = arith.constant 9.99999974E-6 : f32
    %22 = vector.broadcast %cst_14 : f32 to vector<10x1xf32>
    %23 = arith.addf %19, %22 : vector<10x1xf32>
    %24 = math.rsqrt %23 : vector<10x1xf32>
    %25 = vector.broadcast %24 : vector<10x1xf32> to vector<10x32xf32>
    %26 = arith.mulf %21, %25 : vector<10x32xf32>
    %27 = vector.broadcast %7 : vector<1x32xf32> to vector<10x32xf32>
    %28 = arith.mulf %26, %27 : vector<10x32xf32>
    %29 = vector.broadcast %8 : vector<1x32xf32> to vector<10x32xf32>
    %30 = arith.addf %28, %29 : vector<10x32xf32>
    %c0_15 = arith.constant 0 : index
    %c256 = arith.constant 256 : index
    %c0_16 = arith.constant 0 : index
    %31 = vector.load %arg1[%c0_15, %c256, %c0_16] : memref<2x264x128xf32, #tpu.memory_space<vmem>>, vector<1x1x32xf32>
    %32 = vector.shape_cast %31 : vector<1x1x32xf32> to vector<1x32xf32>
    %c0_17 = arith.constant 0 : index
    %c257 = arith.constant 257 : index
    %c0_18 = arith.constant 0 : index
    %33 = vector.load %arg1[%c0_17, %c257, %c0_18] : memref<2x264x128xf32, #tpu.memory_space<vmem>>, vector<1x1x32xf32>
    %34 = vector.shape_cast %33 : vector<1x1x32xf32> to vector<1x32xf32>
    %cst_19 = arith.constant dense<0.000000e+00> : vector<10xf32>
    %35 = vector.multi_reduction <add>, %30, %cst_19 [1] : vector<10x32xf32> to vector<10xf32>
    %36 = vector.shape_cast %35 : vector<10xf32> to vector<10x1xf32>
    %cst_20 = arith.constant 3.200000e+01 : f32
    %37 = vector.broadcast %cst_20 : f32 to vector<10x1xf32>
    %38 = arith.divf %36, %37 : vector<10x1xf32>
    %39 = vector.broadcast %38 : vector<10x1xf32> to vector<10x32xf32>
    %40 = arith.subf %30, %39 : vector<10x32xf32>
    %41 = arith.mulf %40, %40 : vector<10x32xf32>
    %cst_21 = arith.constant dense<0.000000e+00> : vector<10xf32>
    %42 = vector.multi_reduction <add>, %41, %cst_21 [1] : vector<10x32xf32> to vector<10xf32>
    %43 = vector.shape_cast %42 : vector<10xf32> to vector<10x1xf32>
    %cst_22 = arith.constant 3.200000e+01 : f32
    %44 = vector.broadcast %cst_22 : f32 to vector<10x1xf32>
    %45 = arith.divf %43, %44 : vector<10x1xf32>
    %46 = vector.broadcast %38 : vector<10x1xf32> to vector<10x32xf32>
    %47 = arith.subf %30, %46 : vector<10x32xf32>
    %cst_23 = arith.constant 9.99999974E-6 : f32
    %48 = vector.broadcast %cst_23 : f32 to vector<10x1xf32>
    %49 = arith.addf %45, %48 : vector<10x1xf32>
    %50 = math.rsqrt %49 : vector<10x1xf32>
    %51 = vector.broadcast %50 : vector<10x1xf32> to vector<10x32xf32>
    %52 = arith.mulf %47, %51 : vector<10x32xf32>
    %53 = vector.broadcast %32 : vector<1x32xf32> to vector<10x32xf32>
    %54 = arith.mulf %52, %53 : vector<10x32xf32>
    %55 = vector.broadcast %34 : vector<1x32xf32> to vector<10x32xf32>
    %56 = arith.addf %54, %55 : vector<10x32xf32>
    %c0_24 = arith.constant 0 : index
    %c0_25 = arith.constant 0 : index
    %c0_26 = arith.constant 0 : index
    %57 = vector.load %arg1[%c0_24, %c0_25, %c0_26] : memref<2x264x128xf32, #tpu.memory_space<vmem>>, vector<1x32x96xf32>
    %58 = vector.shape_cast %57 : vector<1x32x96xf32> to vector<32x96xf32>
    %cst_27 = arith.constant dense<0.000000e+00> : vector<10x96xf32>
    %59 = tpu.matmul %56, %58, %cst_27 {dimension_numbers = #tpu.dot_dimension_numbers<[1], [0], [0], [1], [0, 0, 1, 1], [], []>} : vector<10x32xf32>, vector<32x96xf32>, vector<10x96xf32> -> vector<10x96xf32>
    %c0_28 = arith.constant 0 : index
    %c32 = arith.constant 32 : index
    %c0_29 = arith.constant 0 : index
    %60 = vector.load %arg1[%c0_28, %c32, %c0_29] : memref<2x264x128xf32, #tpu.memory_space<vmem>>, vector<1x1x96xf32>
    %61 = vector.shape_cast %60 : vector<1x1x96xf32> to vector<1x96xf32>
    %62 = vector.broadcast %61 : vector<1x96xf32> to vector<10x96xf32>
    %63 = arith.addf %59, %62 : vector<10x96xf32>
    %64 = vector.extract_strided_slice %63 {offsets = [0, 0], sizes = [10, 32], strides = [1, 1]} : vector<10x96xf32> to vector<10x32xf32>
    %65 = vector.extract_strided_slice %63 {offsets = [0, 32], sizes = [10, 64], strides = [1, 1]} : vector<10x96xf32> to vector<10x64xf32>
    %cst_30 = arith.constant dense<0.000000e+00> : vector<40x64xf32>
    %66 = tpu.matmul %0, %65, %cst_30 {dimension_numbers = #tpu.dot_dimension_numbers<[1], [0], [0], [1], [0, 0, 1, 1], [], []>} : vector<40x10xf32>, vector<10x64xf32>, vector<40x64xf32> -> vector<40x64xf32>
    %67 = vector.extract_strided_slice %66 {offsets = [0, 0], sizes = [40, 32], strides = [1, 1]} : vector<40x64xf32> to vector<40x32xf32>
    %68 = arith.mulf %67, %1 : vector<40x32xf32>
    %69 = vector.extract_strided_slice %66 {offsets = [0, 32], sizes = [40, 32], strides = [1, 1]} : vector<40x64xf32> to vector<40x32xf32>
    %70 = arith.mulf %69, %1 : vector<40x32xf32>
    %cst_31 = arith.constant dense<0.000000e+00> : vector<10x40xf32>
    %71 = tpu.matmul %64, %68, %cst_31 {dimension_numbers = #tpu.dot_dimension_numbers<[1], [1], [0], [0], [0, 0, 1, 0], [], []>} : vector<10x32xf32>, vector<40x32xf32>, vector<10x40xf32> -> vector<10x40xf32>
    %72 = arith.addf %71, %2 : vector<10x40xf32>
    %cst_32 = arith.constant dense<0xFF800000> : vector<10xf32>
    %73 = vector.multi_reduction <maximumf>, %72, %cst_32 [1] : vector<10x40xf32> to vector<10xf32>
    %74 = vector.shape_cast %73 : vector<10xf32> to vector<10x1xf32>
    %75 = vector.broadcast %74 : vector<10x1xf32> to vector<10x40xf32>
    %76 = arith.subf %72, %75 : vector<10x40xf32>
    %77 = math.exp %76 : vector<10x40xf32>
    %cst_33 = arith.constant dense<0.000000e+00> : vector<10x40xf32>
    %78 = tpu.matmul %77, %3, %cst_33 {dimension_numbers = #tpu.dot_dimension_numbers<[1], [0], [0], [1], [0, 0, 1, 1], [], []>} : vector<10x40xf32>, vector<40x40xf32>, vector<10x40xf32> -> vector<10x40xf32>
    %79 = tpu.reciprocal %78 {approx = true} : vector<10x40xf32> -> vector<10x40xf32>
    %80 = arith.mulf %77, %79 : vector<10x40xf32>
    %cst_34 = arith.constant dense<0.000000e+00> : vector<10x32xf32>
    %81 = tpu.matmul %80, %70, %cst_34 {dimension_numbers = #tpu.dot_dimension_numbers<[1], [0], [0], [1], [0, 0, 1, 1], [], []>} : vector<10x40xf32>, vector<40x32xf32>, vector<10x32xf32> -> vector<10x32xf32>
    %c0_35 = arith.constant 0 : index
    %c40_36 = arith.constant 40 : index
    %c0_37 = arith.constant 0 : index
    %82 = vector.load %arg1[%c0_35, %c40_36, %c0_37] : memref<2x264x128xf32, #tpu.memory_space<vmem>>, vector<1x32x32xf32>
    %83 = vector.shape_cast %82 : vector<1x32x32xf32> to vector<32x32xf32>
    %cst_38 = arith.constant dense<0.000000e+00> : vector<10x32xf32>
    %84 = tpu.matmul %81, %83, %cst_38 {dimension_numbers = #tpu.dot_dimension_numbers<[1], [0], [0], [1], [0, 0, 1, 1], [], []>} : vector<10x32xf32>, vector<32x32xf32>, vector<10x32xf32> -> vector<10x32xf32>
    %c0_39 = arith.constant 0 : index
    %c72 = arith.constant 72 : index
    %c0_40 = arith.constant 0 : index
    %85 = vector.load %arg1[%c0_39, %c72, %c0_40] : memref<2x264x128xf32, #tpu.memory_space<vmem>>, vector<1x1x32xf32>
    %86 = vector.shape_cast %85 : vector<1x1x32xf32> to vector<1x32xf32>
    %87 = vector.broadcast %86 : vector<1x32xf32> to vector<10x32xf32>
    %88 = arith.addf %84, %87 : vector<10x32xf32>
    %89 = arith.addf %30, %88 : vector<10x32xf32>
    %c0_41 = arith.constant 0 : index
    %c258 = arith.constant 258 : index
    %c0_42 = arith.constant 0 : index
    %90 = vector.load %arg1[%c0_41, %c258, %c0_42] : memref<2x264x128xf32, #tpu.memory_space<vmem>>, vector<1x1x32xf32>
    %91 = vector.shape_cast %90 : vector<1x1x32xf32> to vector<1x32xf32>
    %c0_43 = arith.constant 0 : index
    %c259 = arith.constant 259 : index
    %c0_44 = arith.constant 0 : index
    %92 = vector.load %arg1[%c0_43, %c259, %c0_44] : memref<2x264x128xf32, #tpu.memory_space<vmem>>, vector<1x1x32xf32>
    %93 = vector.shape_cast %92 : vector<1x1x32xf32> to vector<1x32xf32>
    %cst_45 = arith.constant dense<0.000000e+00> : vector<10xf32>
    %94 = vector.multi_reduction <add>, %89, %cst_45 [1] : vector<10x32xf32> to vector<10xf32>
    %95 = vector.shape_cast %94 : vector<10xf32> to vector<10x1xf32>
    %cst_46 = arith.constant 3.200000e+01 : f32
    %96 = vector.broadcast %cst_46 : f32 to vector<10x1xf32>
    %97 = arith.divf %95, %96 : vector<10x1xf32>
    %98 = vector.broadcast %97 : vector<10x1xf32> to vector<10x32xf32>
    %99 = arith.subf %89, %98 : vector<10x32xf32>
    %100 = arith.mulf %99, %99 : vector<10x32xf32>
    %cst_47 = arith.constant dense<0.000000e+00> : vector<10xf32>
    %101 = vector.multi_reduction <add>, %100, %cst_47 [1] : vector<10x32xf32> to vector<10xf32>
    %102 = vector.shape_cast %101 : vector<10xf32> to vector<10x1xf32>
    %cst_48 = arith.constant 3.200000e+01 : f32
    %103 = vector.broadcast %cst_48 : f32 to vector<10x1xf32>
    %104 = arith.divf %102, %103 : vector<10x1xf32>
    %105 = vector.broadcast %97 : vector<10x1xf32> to vector<10x32xf32>
    %106 = arith.subf %89, %105 : vector<10x32xf32>
    %cst_49 = arith.constant 9.99999974E-6 : f32
    %107 = vector.broadcast %cst_49 : f32 to vector<10x1xf32>
    %108 = arith.addf %104, %107 : vector<10x1xf32>
    %109 = math.rsqrt %108 : vector<10x1xf32>
    %110 = vector.broadcast %109 : vector<10x1xf32> to vector<10x32xf32>
    %111 = arith.mulf %106, %110 : vector<10x32xf32>
    %112 = vector.broadcast %91 : vector<1x32xf32> to vector<10x32xf32>
    %113 = arith.mulf %111, %112 : vector<10x32xf32>
    %114 = vector.broadcast %93 : vector<1x32xf32> to vector<10x32xf32>
    %115 = arith.addf %113, %114 : vector<10x32xf32>
    %c0_50 = arith.constant 0 : index
    %c80_51 = arith.constant 80 : index
    %c0_52 = arith.constant 0 : index
    %116 = vector.load %arg1[%c0_50, %c80_51, %c0_52] : memref<2x264x128xf32, #tpu.memory_space<vmem>>, vector<1x32x128xf32>
    %117 = vector.shape_cast %116 : vector<1x32x128xf32> to vector<32x128xf32>
    %cst_53 = arith.constant dense<0.000000e+00> : vector<10x128xf32>
    %118 = tpu.matmul %115, %117, %cst_53 {dimension_numbers = #tpu.dot_dimension_numbers<[1], [0], [0], [1], [0, 0, 1, 1], [], []>} : vector<10x32xf32>, vector<32x128xf32>, vector<10x128xf32> -> vector<10x128xf32>
    %c0_54 = arith.constant 0 : index
    %c112 = arith.constant 112 : index
    %c0_55 = arith.constant 0 : index
    %119 = vector.load %arg1[%c0_54, %c112, %c0_55] : memref<2x264x128xf32, #tpu.memory_space<vmem>>, vector<1x1x128xf32>
    %120 = vector.shape_cast %119 : vector<1x1x128xf32> to vector<1x128xf32>
    %121 = vector.broadcast %120 : vector<1x128xf32> to vector<10x128xf32>
    %122 = arith.addf %118, %121 : vector<10x128xf32>
    %cst_56 = arith.constant 1.702000e+00 : f32
    %123 = vector.broadcast %cst_56 : f32 to vector<10x128xf32>
    %124 = arith.mulf %123, %122 : vector<10x128xf32>
    %125 = arith.negf %124 : vector<10x128xf32>
    %126 = math.exp %125 : vector<10x128xf32>
    %cst_57 = arith.constant 1.000000e+00 : f32
    %127 = vector.broadcast %cst_57 : f32 to vector<10x128xf32>
    %128 = arith.addf %127, %126 : vector<10x128xf32>
    %129 = arith.divf %127, %128 : vector<10x128xf32>
    %130 = arith.mulf %122, %129 : vector<10x128xf32>
    %c0_58 = arith.constant 0 : index
    %c120 = arith.constant 120 : index
    %c0_59 = arith.constant 0 : index
    %131 = vector.load %arg1[%c0_58, %c120, %c0_59] : memref<2x264x128xf32, #tpu.memory_space<vmem>>, vector<1x128x32xf32>
    %132 = vector.shape_cast %131 : vector<1x128x32xf32> to vector<128x32xf32>
    %cst_60 = arith.constant dense<0.000000e+00> : vector<10x32xf32>
    %133 = tpu.matmul %130, %132, %cst_60 {dimension_numbers = #tpu.dot_dimension_numbers<[1], [0], [0], [1], [0, 0, 1, 1], [], []>} : vector<10x128xf32>, vector<128x32xf32>, vector<10x32xf32> -> vector<10x32xf32>
    %134 = arith.addf %89, %133 : vector<10x32xf32>
    %c0_61 = arith.constant 0 : index
    %c248 = arith.constant 248 : index
    %c0_62 = arith.constant 0 : index
    %135 = vector.load %arg1[%c0_61, %c248, %c0_62] : memref<2x264x128xf32, #tpu.memory_space<vmem>>, vector<1x1x32xf32>
    %136 = vector.shape_cast %135 : vector<1x1x32xf32> to vector<1x32xf32>
    %137 = vector.broadcast %136 : vector<1x32xf32> to vector<10x32xf32>
    %138 = arith.addf %134, %137 : vector<10x32xf32>
    %c1 = arith.constant 1 : index
    %c256_63 = arith.constant 256 : index
    %c0_64 = arith.constant 0 : index
    %139 = vector.load %arg1[%c1, %c256_63, %c0_64] : memref<2x264x128xf32, #tpu.memory_space<vmem>>, vector<1x1x32xf32>
    %140 = vector.shape_cast %139 : vector<1x1x32xf32> to vector<1x32xf32>
    %c1_65 = arith.constant 1 : index
    %c257_66 = arith.constant 257 : index
    %c0_67 = arith.constant 0 : index
    %141 = vector.load %arg1[%c1_65, %c257_66, %c0_67] : memref<2x264x128xf32, #tpu.memory_space<vmem>>, vector<1x1x32xf32>
    %142 = vector.shape_cast %141 : vector<1x1x32xf32> to vector<1x32xf32>
    %cst_68 = arith.constant dense<0.000000e+00> : vector<10xf32>
    %143 = vector.multi_reduction <add>, %138, %cst_68 [1] : vector<10x32xf32> to vector<10xf32>
    %144 = vector.shape_cast %143 : vector<10xf32> to vector<10x1xf32>
    %cst_69 = arith.constant 3.200000e+01 : f32
    %145 = vector.broadcast %cst_69 : f32 to vector<10x1xf32>
    %146 = arith.divf %144, %145 : vector<10x1xf32>
    %147 = vector.broadcast %146 : vector<10x1xf32> to vector<10x32xf32>
    %148 = arith.subf %138, %147 : vector<10x32xf32>
    %149 = arith.mulf %148, %148 : vector<10x32xf32>
    %cst_70 = arith.constant dense<0.000000e+00> : vector<10xf32>
    %150 = vector.multi_reduction <add>, %149, %cst_70 [1] : vector<10x32xf32> to vector<10xf32>
    %151 = vector.shape_cast %150 : vector<10xf32> to vector<10x1xf32>
    %cst_71 = arith.constant 3.200000e+01 : f32
    %152 = vector.broadcast %cst_71 : f32 to vector<10x1xf32>
    %153 = arith.divf %151, %152 : vector<10x1xf32>
    %154 = vector.broadcast %146 : vector<10x1xf32> to vector<10x32xf32>
    %155 = arith.subf %138, %154 : vector<10x32xf32>
    %cst_72 = arith.constant 9.99999974E-6 : f32
    %156 = vector.broadcast %cst_72 : f32 to vector<10x1xf32>
    %157 = arith.addf %153, %156 : vector<10x1xf32>
    %158 = math.rsqrt %157 : vector<10x1xf32>
    %159 = vector.broadcast %158 : vector<10x1xf32> to vector<10x32xf32>
    %160 = arith.mulf %155, %159 : vector<10x32xf32>
    %161 = vector.broadcast %140 : vector<1x32xf32> to vector<10x32xf32>
    %162 = arith.mulf %160, %161 : vector<10x32xf32>
    %163 = vector.broadcast %142 : vector<1x32xf32> to vector<10x32xf32>
    %164 = arith.addf %162, %163 : vector<10x32xf32>
    %c1_73 = arith.constant 1 : index
    %c0_74 = arith.constant 0 : index
    %c0_75 = arith.constant 0 : index
    %165 = vector.load %arg1[%c1_73, %c0_74, %c0_75] : memref<2x264x128xf32, #tpu.memory_space<vmem>>, vector<1x32x96xf32>
    %166 = vector.shape_cast %165 : vector<1x32x96xf32> to vector<32x96xf32>
    %cst_76 = arith.constant dense<0.000000e+00> : vector<10x96xf32>
    %167 = tpu.matmul %164, %166, %cst_76 {dimension_numbers = #tpu.dot_dimension_numbers<[1], [0], [0], [1], [0, 0, 1, 1], [], []>} : vector<10x32xf32>, vector<32x96xf32>, vector<10x96xf32> -> vector<10x96xf32>
    %c1_77 = arith.constant 1 : index
    %c32_78 = arith.constant 32 : index
    %c0_79 = arith.constant 0 : index
    %168 = vector.load %arg1[%c1_77, %c32_78, %c0_79] : memref<2x264x128xf32, #tpu.memory_space<vmem>>, vector<1x1x96xf32>
    %169 = vector.shape_cast %168 : vector<1x1x96xf32> to vector<1x96xf32>
    %170 = vector.broadcast %169 : vector<1x96xf32> to vector<10x96xf32>
    %171 = arith.addf %167, %170 : vector<10x96xf32>
    %172 = vector.extract_strided_slice %171 {offsets = [0, 0], sizes = [10, 32], strides = [1, 1]} : vector<10x96xf32> to vector<10x32xf32>
    %173 = vector.extract_strided_slice %171 {offsets = [0, 32], sizes = [10, 64], strides = [1, 1]} : vector<10x96xf32> to vector<10x64xf32>
    %cst_80 = arith.constant dense<0.000000e+00> : vector<40x64xf32>
    %174 = tpu.matmul %0, %173, %cst_80 {dimension_numbers = #tpu.dot_dimension_numbers<[1], [0], [0], [1], [0, 0, 1, 1], [], []>} : vector<40x10xf32>, vector<10x64xf32>, vector<40x64xf32> -> vector<40x64xf32>
    %175 = vector.extract_strided_slice %174 {offsets = [0, 0], sizes = [40, 32], strides = [1, 1]} : vector<40x64xf32> to vector<40x32xf32>
    %176 = arith.mulf %175, %1 : vector<40x32xf32>
    %177 = vector.extract_strided_slice %174 {offsets = [0, 32], sizes = [40, 32], strides = [1, 1]} : vector<40x64xf32> to vector<40x32xf32>
    %178 = arith.mulf %177, %1 : vector<40x32xf32>
    %cst_81 = arith.constant dense<0.000000e+00> : vector<10x40xf32>
    %179 = tpu.matmul %172, %176, %cst_81 {dimension_numbers = #tpu.dot_dimension_numbers<[1], [1], [0], [0], [0, 0, 1, 0], [], []>} : vector<10x32xf32>, vector<40x32xf32>, vector<10x40xf32> -> vector<10x40xf32>
    %180 = arith.addf %179, %2 : vector<10x40xf32>
    %cst_82 = arith.constant dense<0xFF800000> : vector<10xf32>
    %181 = vector.multi_reduction <maximumf>, %180, %cst_82 [1] : vector<10x40xf32> to vector<10xf32>
    %182 = vector.shape_cast %181 : vector<10xf32> to vector<10x1xf32>
    %183 = vector.broadcast %182 : vector<10x1xf32> to vector<10x40xf32>
    %184 = arith.subf %180, %183 : vector<10x40xf32>
    %185 = math.exp %184 : vector<10x40xf32>
    %cst_83 = arith.constant dense<0.000000e+00> : vector<10x40xf32>
    %186 = tpu.matmul %185, %3, %cst_83 {dimension_numbers = #tpu.dot_dimension_numbers<[1], [0], [0], [1], [0, 0, 1, 1], [], []>} : vector<10x40xf32>, vector<40x40xf32>, vector<10x40xf32> -> vector<10x40xf32>
    %187 = tpu.reciprocal %186 {approx = true} : vector<10x40xf32> -> vector<10x40xf32>
    %188 = arith.mulf %185, %187 : vector<10x40xf32>
    %cst_84 = arith.constant dense<0.000000e+00> : vector<10x32xf32>
    %189 = tpu.matmul %188, %178, %cst_84 {dimension_numbers = #tpu.dot_dimension_numbers<[1], [0], [0], [1], [0, 0, 1, 1], [], []>} : vector<10x40xf32>, vector<40x32xf32>, vector<10x32xf32> -> vector<10x32xf32>
    %c1_85 = arith.constant 1 : index
    %c40_86 = arith.constant 40 : index
    %c0_87 = arith.constant 0 : index
    %190 = vector.load %arg1[%c1_85, %c40_86, %c0_87] : memref<2x264x128xf32, #tpu.memory_space<vmem>>, vector<1x32x32xf32>
    %191 = vector.shape_cast %190 : vector<1x32x32xf32> to vector<32x32xf32>
    %cst_88 = arith.constant dense<0.000000e+00> : vector<10x32xf32>
    %192 = tpu.matmul %189, %191, %cst_88 {dimension_numbers = #tpu.dot_dimension_numbers<[1], [0], [0], [1], [0, 0, 1, 1], [], []>} : vector<10x32xf32>, vector<32x32xf32>, vector<10x32xf32> -> vector<10x32xf32>
    %c1_89 = arith.constant 1 : index
    %c72_90 = arith.constant 72 : index
    %c0_91 = arith.constant 0 : index
    %193 = vector.load %arg1[%c1_89, %c72_90, %c0_91] : memref<2x264x128xf32, #tpu.memory_space<vmem>>, vector<1x1x32xf32>
    %194 = vector.shape_cast %193 : vector<1x1x32xf32> to vector<1x32xf32>
    %195 = vector.broadcast %194 : vector<1x32xf32> to vector<10x32xf32>
    %196 = arith.addf %192, %195 : vector<10x32xf32>
    %197 = arith.addf %138, %196 : vector<10x32xf32>
    %c1_92 = arith.constant 1 : index
    %c258_93 = arith.constant 258 : index
    %c0_94 = arith.constant 0 : index
    %198 = vector.load %arg1[%c1_92, %c258_93, %c0_94] : memref<2x264x128xf32, #tpu.memory_space<vmem>>, vector<1x1x32xf32>
    %199 = vector.shape_cast %198 : vector<1x1x32xf32> to vector<1x32xf32>
    %c1_95 = arith.constant 1 : index
    %c259_96 = arith.constant 259 : index
    %c0_97 = arith.constant 0 : index
    %200 = vector.load %arg1[%c1_95, %c259_96, %c0_97] : memref<2x264x128xf32, #tpu.memory_space<vmem>>, vector<1x1x32xf32>
    %201 = vector.shape_cast %200 : vector<1x1x32xf32> to vector<1x32xf32>
    %cst_98 = arith.constant dense<0.000000e+00> : vector<10xf32>
    %202 = vector.multi_reduction <add>, %197, %cst_98 [1] : vector<10x32xf32> to vector<10xf32>
    %203 = vector.shape_cast %202 : vector<10xf32> to vector<10x1xf32>
    %cst_99 = arith.constant 3.200000e+01 : f32
    %204 = vector.broadcast %cst_99 : f32 to vector<10x1xf32>
    %205 = arith.divf %203, %204 : vector<10x1xf32>
    %206 = vector.broadcast %205 : vector<10x1xf32> to vector<10x32xf32>
    %207 = arith.subf %197, %206 : vector<10x32xf32>
    %208 = arith.mulf %207, %207 : vector<10x32xf32>
    %cst_100 = arith.constant dense<0.000000e+00> : vector<10xf32>
    %209 = vector.multi_reduction <add>, %208, %cst_100 [1] : vector<10x32xf32> to vector<10xf32>
    %210 = vector.shape_cast %209 : vector<10xf32> to vector<10x1xf32>
    %cst_101 = arith.constant 3.200000e+01 : f32
    %211 = vector.broadcast %cst_101 : f32 to vector<10x1xf32>
    %212 = arith.divf %210, %211 : vector<10x1xf32>
    %213 = vector.broadcast %205 : vector<10x1xf32> to vector<10x32xf32>
    %214 = arith.subf %197, %213 : vector<10x32xf32>
    %cst_102 = arith.constant 9.99999974E-6 : f32
    %215 = vector.broadcast %cst_102 : f32 to vector<10x1xf32>
    %216 = arith.addf %212, %215 : vector<10x1xf32>
    %217 = math.rsqrt %216 : vector<10x1xf32>
    %218 = vector.broadcast %217 : vector<10x1xf32> to vector<10x32xf32>
    %219 = arith.mulf %214, %218 : vector<10x32xf32>
    %220 = vector.broadcast %199 : vector<1x32xf32> to vector<10x32xf32>
    %221 = arith.mulf %219, %220 : vector<10x32xf32>
    %222 = vector.broadcast %201 : vector<1x32xf32> to vector<10x32xf32>
    %223 = arith.addf %221, %222 : vector<10x32xf32>
    %c1_103 = arith.constant 1 : index
    %c80_104 = arith.constant 80 : index
    %c0_105 = arith.constant 0 : index
    %224 = vector.load %arg1[%c1_103, %c80_104, %c0_105] : memref<2x264x128xf32, #tpu.memory_space<vmem>>, vector<1x32x128xf32>
    %225 = vector.shape_cast %224 : vector<1x32x128xf32> to vector<32x128xf32>
    %cst_106 = arith.constant dense<0.000000e+00> : vector<10x128xf32>
    %226 = tpu.matmul %223, %225, %cst_106 {dimension_numbers = #tpu.dot_dimension_numbers<[1], [0], [0], [1], [0, 0, 1, 1], [], []>} : vector<10x32xf32>, vector<32x128xf32>, vector<10x128xf32> -> vector<10x128xf32>
    %c1_107 = arith.constant 1 : index
    %c112_108 = arith.constant 112 : index
    %c0_109 = arith.constant 0 : index
    %227 = vector.load %arg1[%c1_107, %c112_108, %c0_109] : memref<2x264x128xf32, #tpu.memory_space<vmem>>, vector<1x1x128xf32>
    %228 = vector.shape_cast %227 : vector<1x1x128xf32> to vector<1x128xf32>
    %229 = vector.broadcast %228 : vector<1x128xf32> to vector<10x128xf32>
    %230 = arith.addf %226, %229 : vector<10x128xf32>
    %cst_110 = arith.constant 1.702000e+00 : f32
    %231 = vector.broadcast %cst_110 : f32 to vector<10x128xf32>
    %232 = arith.mulf %231, %230 : vector<10x128xf32>
    %233 = arith.negf %232 : vector<10x128xf32>
    %234 = math.exp %233 : vector<10x128xf32>
    %cst_111 = arith.constant 1.000000e+00 : f32
    %235 = vector.broadcast %cst_111 : f32 to vector<10x128xf32>
    %236 = arith.addf %235, %234 : vector<10x128xf32>
    %237 = arith.divf %235, %236 : vector<10x128xf32>
    %238 = arith.mulf %230, %237 : vector<10x128xf32>
    %c1_112 = arith.constant 1 : index
    %c120_113 = arith.constant 120 : index
    %c0_114 = arith.constant 0 : index
    %239 = vector.load %arg1[%c1_112, %c120_113, %c0_114] : memref<2x264x128xf32, #tpu.memory_space<vmem>>, vector<1x128x32xf32>
    %240 = vector.shape_cast %239 : vector<1x128x32xf32> to vector<128x32xf32>
    %cst_115 = arith.constant dense<0.000000e+00> : vector<10x32xf32>
    %241 = tpu.matmul %238, %240, %cst_115 {dimension_numbers = #tpu.dot_dimension_numbers<[1], [0], [0], [1], [0, 0, 1, 1], [], []>} : vector<10x128xf32>, vector<128x32xf32>, vector<10x32xf32> -> vector<10x32xf32>
    %242 = arith.addf %197, %241 : vector<10x32xf32>
    %c1_116 = arith.constant 1 : index
    %c248_117 = arith.constant 248 : index
    %c0_118 = arith.constant 0 : index
    %243 = vector.load %arg1[%c1_116, %c248_117, %c0_118] : memref<2x264x128xf32, #tpu.memory_space<vmem>>, vector<1x1x32xf32>
    %244 = vector.shape_cast %243 : vector<1x1x32xf32> to vector<1x32xf32>
    %245 = vector.broadcast %244 : vector<1x32xf32> to vector<10x32xf32>
    %246 = arith.addf %242, %245 : vector<10x32xf32>
    %247 = vector.extract_strided_slice %246 {offsets = [0, 0], sizes = [1, 32], strides = [1, 1]} : vector<10x32xf32> to vector<1x32xf32>
    %248 = vector.extract_strided_slice %246 {offsets = [5, 0], sizes = [1, 32], strides = [1, 1]} : vector<10x32xf32> to vector<1x32xf32>
    %249 = tpu.concatenate %247, %248 in 0 : vector<1x32xf32>, vector<1x32xf32> -> vector<2x32xf32>
    %c202 = arith.constant 202 : index
    %c0_119 = arith.constant 0 : index
    %250 = vector.load %arg2[%c202, %c0_119] : memref<240x32xf32, #tpu.memory_space<vmem>>, vector<1x32xf32>
    %c203 = arith.constant 203 : index
    %c0_120 = arith.constant 0 : index
    %251 = vector.load %arg2[%c203, %c0_120] : memref<240x32xf32, #tpu.memory_space<vmem>>, vector<1x32xf32>
    %cst_121 = arith.constant dense<0.000000e+00> : vector<2xf32>
    %252 = vector.multi_reduction <add>, %249, %cst_121 [1] : vector<2x32xf32> to vector<2xf32>
    %253 = vector.shape_cast %252 : vector<2xf32> to vector<2x1xf32>
    %cst_122 = arith.constant 3.200000e+01 : f32
    %254 = vector.broadcast %cst_122 : f32 to vector<2x1xf32>
    %255 = arith.divf %253, %254 : vector<2x1xf32>
    %256 = vector.broadcast %255 : vector<2x1xf32> to vector<2x32xf32>
    %257 = arith.subf %249, %256 : vector<2x32xf32>
    %258 = arith.mulf %257, %257 : vector<2x32xf32>
    %cst_123 = arith.constant dense<0.000000e+00> : vector<2xf32>
    %259 = vector.multi_reduction <add>, %258, %cst_123 [1] : vector<2x32xf32> to vector<2xf32>
    %260 = vector.shape_cast %259 : vector<2xf32> to vector<2x1xf32>
    %cst_124 = arith.constant 3.200000e+01 : f32
    %261 = vector.broadcast %cst_124 : f32 to vector<2x1xf32>
    %262 = arith.divf %260, %261 : vector<2x1xf32>
    %263 = vector.broadcast %255 : vector<2x1xf32> to vector<2x32xf32>
    %264 = arith.subf %249, %263 : vector<2x32xf32>
    %cst_125 = arith.constant 9.99999974E-6 : f32
    %265 = vector.broadcast %cst_125 : f32 to vector<2x1xf32>
    %266 = arith.addf %262, %265 : vector<2x1xf32>
    %267 = math.rsqrt %266 : vector<2x1xf32>
    %268 = vector.broadcast %267 : vector<2x1xf32> to vector<2x32xf32>
    %269 = arith.mulf %264, %268 : vector<2x32xf32>
    %270 = vector.broadcast %250 : vector<1x32xf32> to vector<2x32xf32>
    %271 = arith.mulf %269, %270 : vector<2x32xf32>
    %272 = vector.broadcast %251 : vector<1x32xf32> to vector<2x32xf32>
    %273 = arith.addf %271, %272 : vector<2x32xf32>
    %c208 = arith.constant 208 : index
    %c0_126 = arith.constant 0 : index
    %274 = vector.load %arg2[%c208, %c0_126] : memref<240x32xf32, #tpu.memory_space<vmem>>, vector<32x16xf32>
    %cst_127 = arith.constant dense<0.000000e+00> : vector<2x16xf32>
    %275 = tpu.matmul %273, %274, %cst_127 {dimension_numbers = #tpu.dot_dimension_numbers<[1], [0], [0], [1], [0, 0, 1, 1], [], []>} : vector<2x32xf32>, vector<32x16xf32>, vector<2x16xf32> -> vector<2x16xf32>
    %c0_128 = arith.constant 0 : index
    %c0_129 = arith.constant 0 : index
    %276 = vector.load %arg4[%c0_128, %c0_129] : memref<2x16xf32, #tpu.memory_space<vmem>>, vector<2x16xf32>
    tpu.vector_store %arg4[%c0_128, %c0_129], %275 {strides = array<i32>} : memref<2x16xf32, #tpu.memory_space<vmem>>, vector<2x16xf32>,
    return
  }
}

</mosaic_0001>

<bundles_post_ra>
// kernel: encode_image.1
= control target key start
LH: loop header
LB: loop body
LE: loop exit
PB: predicated region body
PF: predicated region fallthrough
CT: control target
= control target key end

     0   :  { %s2131_s0 = inlined_call_operand.vmem [shape: f32[10,200], index: 0, kind: input, shape index: {}]   ;;  %s2132_s1 = inlined_call_operand.vmem [shape: f32[2,264,128], index: 1, kind: input, shape index: {}]   ;;  %s2133_s2 = inlined_call_operand.vmem [shape: f32[240,32], index: 2, kind: input, shape index: {}]   ;;  %s2134_s3 = inlined_call_operand.vmem [shape: f32[136,40], index: 3, kind: input, shape index: {}]   ;;  %s2135_s4 = inlined_call_operand.hbm [shape: f32[2,16], index: 4, kind: output, shape index: {}]  }
   0x1   :  { %v50_v0 = vld [vmem:[%s2133_s2 + $0x78] sm:$0xff]  ;;  %v49_v1 = vld [vmem:[%s2133_s2 + $0x70] sm:$0xff]  ;;  %v48_v2 = vld [vmem:[%s2133_s2 + $0x68] sm:$0xff] }
   0x2   :  { %71 = vmatpush.msra.mxu0 %v50_v0  ;;  %v59_v3 = vld [vmem:[%s2133_s2 + $0xc0] sm:$0xff]  ;;  %v58_v4 = vld [vmem:[%s2133_s2 + $0xb8] sm:$0xff]  ;;  %v57_v6 = vld [vmem:[%s2133_s2 + $0xb0] sm:$0xff] }
   0x3   :  { %101 = vmatpush.msra.mxu1 %v59_v3  ;;  %v47_v5 = vld [vmem:[%s2133_s2 + $0x60] sm:$0xff]  ;;  %v46_v7 = vld [vmem:[%s2133_s2 + $0x58] sm:$0xff]  ;;  %v56_v8 = vld [vmem:[%s2133_s2 + $0xa8] sm:$0xff] }
   0x4   :  { %72 = vmatpush.msra.mxu0 %v49_v1  ;;  %v45_v9 = vld [vmem:[%s2133_s2 + $0x50] sm:$0xff]  ;;  %v55_v10 = vld [vmem:[%s2133_s2 + $0xa0] sm:$0xff]  ;;  %v44_v11 = vld [vmem:[%s2133_s2 + $0x48] sm:$0xff] }
   0x5   :  { %102 = vmatpush.msra.mxu1 %v58_v4  ;;  %v54_v12 = vld [vmem:[%s2133_s2 + $0x98] sm:$0xff]  ;;  %v43_v13 = vld [vmem:[%s2133_s2 + $0x40] sm:$0xff]  ;;  %v53_v14 = vld [vmem:[%s2133_s2 + $0x90] sm:$0xff] }
   0x6   :  { %73 = vmatpush.msra.mxu0 %v48_v2  ;;  %v42_v15 = vld [vmem:[%s2133_s2 + $0x38] sm:$0xff]  ;;  %v52_v16 = vld [vmem:[%s2133_s2 + $0x88] sm:$0xff]  ;;  %v41_v17 = vld [vmem:[%s2133_s2 + $0x30] sm:$0xff] }
   0x7   :  { %103 = vmatpush.msra.mxu1 %v57_v6  ;;  %v51_v18 = vld [vmem:[%s2133_s2 + $0x80] sm:$0xff] }
   0x8   :  { %74 = vmatpush.msra.mxu0 %v47_v5 }
   0x9   :  { %104 = vmatpush.msra.mxu1 %v56_v8 }
   0xa   :  { %75 = vmatpush.msra.mxu0 %v46_v7 }
   0xb   :  { %105 = vmatpush.msra.mxu1 %v55_v10 }
   0xc   :  { %76 = vmatpush.msra.mxu0 %v45_v9 }
   0xd   :  { %106 = vmatpush.msra.mxu1 %v54_v12 }
   0xe   :  { %77 = vmatpush.msra.mxu0 %v44_v11 }
   0xf   :  { %107 = vmatpush.msra.mxu1 %v53_v14 }
  0x10   :  { %78 = vmatpush.msra.mxu0 %v43_v13 }
  0x11   :  { %9 = vsyncpa [#allocation3], 0  ;;  %108 = vmatpush.msra.mxu1 %v52_v16  ;;  %v61_v19 = vld [vmem:[%s2131_s0 + $0x8] sm:$0xff]  ;;  %vm64_vm0 = vcmask 588800   ;;  %v39_v21 = vld [vmem:[%s2133_s2 + $0x20] sm:$0xff]  ;;  %vm119_vm1 = vcmask 261120  }
  0x12   :  { %79 = vmatpush.msra.mxu0 %v42_v15  ;;  %v40_v20 = vld [vmem:[%s2133_s2 + $0x28] sm:$0xff]  ;;  %v38_v22 = vld [vmem:[%s2133_s2 + $0x18] sm:$0xff]  ;;  %v37_v23 = vld [vmem:[%s2133_s2 + $0x10] sm:$0xff]  ;;  %vm123_vm2 = vcmask 254976   ;;  %v1480_v37 = vmov 32.0   ;;  %s1481_s12 = smov 96  }
  0x13   :  { %109 = vmatpush.msra.mxu1 %v51_v18  ;;  %v63_v24 = vld [vmem:[%s2131_s0 + $0x18] sm:$0x3]  ;;  %v36_v25 = vld [vmem:[%s2133_s2 + $0x8] sm:$0xff]  ;;  %v35_v26 = vld [vmem:[%s2133_s2] sm:$0xff]  ;;  %1398 = vrcp.f32 %v1480_v37  ;;  %s1482_s17 = smov 32   ;;  %s1483_s23 = smov [#allocation2]  }
  0x14   :  { %80 = vmatpush.msra.mxu0 %v41_v17  ;;  %1263 = vmatmul.msk.f32.vlgmr.msra.gmra.mxu1 %vm64_vm0, %v61_v19  ;;  %v60_v27 = vld [vmem:[%s2131_s0] sm:$0xff]  ;;  %v62_v28 = vld [vmem:[%s2131_s0 + $0x10] sm:$0x3]  ;;  %v1378_v4 = vld [vmem:[%s2133_s2 + $0xc8] ss:$0 sm:$0xff]  ;;  %s1252_s24 = sshll.u32 %s1483_s23, 4  ;;  %s1253_s24 = int_to_ptr.vmem [resolvable:$true] %s1252_s24 }
  0x15   :  { %v1379_v8 = vld [vmem:[%s2133_s2 + $0xc9] ss:$0 sm:$0xff]  ;;  %s1254_s27 = sshll.u32 %s2135_s4, 4  ;;  %s1255_s27 = int_to_ptr.hbm [resolvable:$true] %s1254_s27 }
  0x16   :  { %81 = vmatpush.msra.mxu0 %v40_v20 }
  0x18   :  { %82 = vmatpush.msra.mxu0 %v39_v21 }
  0x19   :  { %v1399_v38 = vpop.eup %1398 }
  0x1a   :  { %83 = vmatpush.msra.mxu0 %v38_v22  ;;  %v128_v39 = vmul.f32 32.0, %v1399_v38  ;;  %vm132_vm3 = vweird.f32 %v1399_v38 }
  0x1c   :  { %84 = vmatpush.msra.mxu0 %v37_v23  ;;  %1264 = vmatmul.msk.f32.gmra.mxu1 %vm64_vm0, %v63_v24  ;;  %v129_v40 = vsub.f32 1.0, %v128_v39  ;;  %vm288_vm0 = vcmask 1041408  }
  0x1e   :  { %85 = vmatpush.msra.mxu0 %v36_v25  ;;  %v130_v41 = vmul.f32 %v1399_v38, %v129_v40 }
  0x20   :  { %86 = vmatpush.msra.mxu0 %v35_v26  ;;  %v131_v42 = vadd.f32 %v1399_v38, %v130_v41 }
  0x21   :  { %87 = vmatmul.f32.vlgmr.msra.gmra.mxu0 %v60_v27 }
  0x22   :  { %v1598_v43 = vsel %vm132_vm3, %v1399_v38, %v131_v42  ;;  %vm272_vm3 = vcmask 80896  }
  0x29   :  { %90 = vmatmul.f32.gmra.mxu0 %v62_v28 }
  0x91   :  { %v111_v29 = vpop.f32.mrf.mxu1 }
  0x99   :  { %v114_v33 = vpop.f32.mrf.mxu1 }
  0x9e   :  { %v88_v30 = vpop.f32.mrf.mxu0 }
  0x9f   :  { %v112_v31 = vadd.f32 %v111_v29, %v88_v30  ;;  %v233_v30 = vld [vmem:[%s2132_s1 + $0x18] sm:$0xff] }
  0xa0   :  { %254 = vmatpush.msra.mxu2 %v233_v30 }
  0xa1   :  { %v120_v32 = vsel %vm119_vm1, %v112_v31, 0.0 }
  0xa2   :  { %121 = vadd.xlane.f32.xlu0 %v120_v32  ;;  %v231_v32 = vld [vmem:[%s2132_s1 + $0x8] sm:$0xff] }
  0xa6   :  { %v91_v34 = vpop.f32.mrf.mxu0 }
  0xa7   :  { %v115_v35 = vadd.f32 %v114_v33, %v91_v34  ;;  %v230_v33 = vld [vmem:[%s2132_s1] sm:$0xff] }
  0xa9   :  { %v124_v36 = vsel %vm123_vm2, %v115_v35, 0.0 }
  0xaa   :  { %125 = vadd.xlane.f32.xlu0 %v124_v36 }
 0x115   :  { %v122_v44 = vpop.xlane.xlu0 %121 }
 0x116   :  { %v134_v45 = vmul.f32 %v1598_v43, %v122_v44 }
 0x118   :  { %v136_v46 = vsub.f32 %v112_v31, %v134_v45  ;;  %v232_v31 = vld [vmem:[%s2132_s1 + $0x10] sm:$0xff] }
 0x119   :  { %255 = vmatpush.msra.mxu2 %v232_v31 }
 0x11a   :  { %v138_v47 = vmul.f32 %v136_v46, %v136_v46 }
 0x11b   :  { %256 = vmatpush.msra.mxu2 %v231_v32 }
 0x11c   :  { %v140_v48 = vsel %vm119_vm1, %v138_v47, 0.0 }
 0x11d   :  { %141 = vadd.xlane.f32.xlu1 %v140_v48  ;;  %v126_v49 = vpop.xlane.xlu0 %125  ;;  %257 = vmatpush.msra.mxu2 %v230_v33 }
 0x11e   :  { %v135_v50 = vmul.f32 %v1598_v43, %v126_v49  ;;  %v1380_v49 = vld [vmem:[%s2132_s1 + $0x100] ss:$0 sm:$0xff] }
 0x120   :  { %v137_v51 = vsub.f32 %v115_v35, %v135_v50 }
 0x122   :  { %v139_v52 = vmul.f32 %v137_v51, %v137_v51 }
 0x124   :  { %v143_v53 = vsel %vm123_vm2, %v139_v52, 0.0 }
 0x125   :  { %144 = vadd.xlane.f32.xlu1 %v143_v53  ;;  %v1381_v53 = vld [vmem:[%s2132_s1 + $0x101] ss:$0 sm:$0xff] }
 0x190   :  { %v142_v54 = vpop.xlane.xlu1 %141 }
 0x191   :  { %v146_v55 = vmul.f32 %v142_v54, %v1598_v43 }
 0x193   :  { %v148_v56 = vadd.f32 1e-05, %v146_v55 }
 0x195   :  { %1400 = vrsqrt.f32 %v148_v56  ;;  %vm156_vm5 = vweird.f32 %v148_v56 }
 0x198   :  { %v145_v57 = vpop.xlane.xlu1 %144 }
 0x199   :  { %v147_v58 = vmul.f32 %v145_v57, %v1598_v43 }
 0x19b   :  { %v1401_v59 = vpop.eup %1400  ;;  %v149_v60 = vadd.f32 1e-05, %v147_v58 }
 0x19c   :  { %v151_v61 = vmul.f32 %v1401_v59, %v148_v56  ;;  %vm157_vm4 = vweird.f32 %v1401_v59 }
 0x19d   :  { %1402 = vrsqrt.f32 %v149_v60  ;;  %vm158_vm6 = vmor %vm156_vm5, %vm157_vm4  ;;  %vm166_vm8 = vweird.f32 %v149_v60  ;;  %vm395_vm4 = vcmask 326656   ;;  %vm399_vm5 = vcmask 320512  }
 0x19e   :  { %v152_v62 = vmul.f32 %v1401_v59, %v151_v61 }
 0x1a0   :  { %v153_v63 = vmul.f32 0.5, %v152_v62 }
 0x1a2   :  { %v154_v0 = vsub.f32 1.5, %v153_v63  ;;  %v1382_v63 = vld [vmem:[%s2132_s1 + $0x20] ss:$0 sm:$0xff] }
 0x1a3   :  { %v1403_v1 = vpop.eup %1402 }
 0x1a4   :  { %v155_v2 = vmul.f32 %v1401_v59, %v154_v0  ;;  %v161_v3 = vmul.f32 %v1403_v1, %v149_v60  ;;  %vm167_vm7 = vweird.f32 %v1403_v1 }
 0x1a5   :  { %vm168_vm9 = vmor %vm166_vm8, %vm167_vm7 }
 0x1a6   :  { %v159_v5 = vsel %vm158_vm6, %v1401_v59, %v155_v2  ;;  %v162_v6 = vmul.f32 %v1403_v1, %v161_v3 }
 0x1a7   :  { %v170_v7 = vmul.f32 %v159_v5, %v136_v46  ;;  %v1658_v5 = vld [vmem:[%s2134_s3 + $0x38] sm:$0xff] }
 0x1a8   :  { %v163_v9 = vmul.f32 0.5, %v162_v6  ;;  %v1663_v6 = vld [vmem:[%s2134_s3 + $0x40] sm:$0xff] }
 0x1a9   :  { %v173_v10 = vmul.f32 %v1378_v4, %v170_v7  ;;  %v1672_v7 = vld [vmem:[%s2134_s3 + $0x8] sm:$0xff] }
 0x1aa   :  { %v164_v11 = vsub.f32 1.5, %v163_v9 }
 0x1ab   :  { %v1612_v12 = vadd.f32 %v1379_v8, %v173_v10  ;;  %v1682_v10 = vld [vmem:[%s2134_s3 + $0x30] sm:$0xff] }
 0x1ac   :  { %v165_v13 = vmul.f32 %v1403_v1, %v164_v11  ;;  %v1687_v11 = vld [vmem:[%s2134_s3 + $0x28] sm:$0xff] }
 0x1ad   :  { %v180_v14 = vsel %vm119_vm1, %v1612_v12, 0.0 }
 0x1ae   :  { %v169_v15 = vsel %vm168_vm9, %v1403_v1, %v165_v13  ;;  %181 = vadd.xlane.f32.xlu2 %v180_v14  ;;  %v1700_v13 = vld [vmem:[%s2134_s3 + $0x10] sm:$0xff]  ;;  %v1707_v14 = vld [vmem:[%s2134_s3 + $0x18] sm:$0xff] }
 0x1af   :  { %v171_v16 = vmul.f32 %v169_v15, %v137_v51  ;;  %v1714_v15 = vld [vmem:[%s2134_s3 + $0x20] sm:$0xff] }
 0x1b1   :  { %v174_v17 = vmul.f32 %v1378_v4, %v171_v16 }
 0x1b3   :  { %v1616_v18 = vadd.f32 %v1379_v8, %v174_v17  ;;  %v1677_v8 = vld [vmem:[%s2134_s3] sm:$0xff] }
 0x1b5   :  { %v183_v19 = vsel %vm123_vm2, %v1616_v18, 0.0 }
 0x1b6   :  { %184 = vadd.xlane.f32.xlu2 %v183_v19 }
 0x221   :  { %v182_v20 = vpop.xlane.xlu2 %181 }
 0x222   :  { %v186_v21 = vmul.f32 %v182_v20, %v1598_v43 }
 0x224   :  { %v188_v22 = vsub.f32 %v1612_v12, %v186_v21 }
 0x226   :  { %v190_v23 = vmul.f32 %v188_v22, %v188_v22 }
 0x228   :  { %v192_v24 = vsel %vm119_vm1, %v190_v23, 0.0 }
 0x229   :  { %193 = vadd.xlane.f32.xlu0 %v192_v24  ;;  %v185_v25 = vpop.xlane.xlu2 %184 }
 0x22a   :  { %v187_v26 = vmul.f32 %v185_v25, %v1598_v43 }
 0x22c   :  { %v189_v27 = vsub.f32 %v1616_v18, %v187_v26  ;;  %v1730_v26 = vld [vmem:[%s2134_s3 + $0x48] sm:$0xff] }
 0x22e   :  { %v191_v28 = vmul.f32 %v189_v27, %v189_v27 }
 0x230   :  { %v195_v29 = vsel %vm123_vm2, %v191_v28, 0.0 }
 0x231   :  { %196 = vadd.xlane.f32.xlu1 %v195_v29 }
 0x29c   :  { %v194_v34 = vpop.xlane.xlu0 %193 }
 0x29d   :  { %v198_v35 = vmul.f32 %v194_v34, %v1598_v43  ;;  %v1747_v34 = vld [vmem:[%s2134_s3 + $0x50] sm:$0xff] }
 0x29f   :  { %v200_v36 = vadd.f32 1e-05, %v198_v35 }
 0x2a1   :  { %1404 = vrsqrt.f32 %v200_v36  ;;  %vm208_vm11 = vweird.f32 %v200_v36 }
 0x2a4   :  { %v197_v37 = vpop.xlane.xlu1 %196 }
 0x2a5   :  { %v199_v38 = vmul.f32 %v197_v37, %v1598_v43 }
 0x2a7   :  { %v1405_v39 = vpop.eup %1404  ;;  %v201_v40 = vadd.f32 1e-05, %v199_v38  ;;  %v1754_v38 = vld [vmem:[%s2134_s3 + $0x58] sm:$0x3] }
 0x2a8   :  { %v203_v41 = vmul.f32 %v1405_v39, %v200_v36  ;;  %vm209_vm10 = vweird.f32 %v1405_v39 }
 0x2a9   :  { %1406 = vrsqrt.f32 %v201_v40  ;;  %vm210_vm12 = vmor %vm208_vm11, %vm209_vm10  ;;  %vm218_vm14 = vweird.f32 %v201_v40 }
 0x2aa   :  { %v204_v42 = vmul.f32 %v1405_v39, %v203_v41 }
 0x2ac   :  { %v205_v44 = vmul.f32 0.5, %v204_v42  ;;  %v1763_v42 = vld [vmem:[%s2134_s3 + $0x80] sm:$0xff] }
 0x2ad   :  { %426 = vmatpush.msrb.mxu1 %v1763_v42 }
 0x2ae   :  { %v206_v45 = vsub.f32 1.5, %v205_v44  ;;  %v1769_v44 = vld [vmem:[%s2134_s3 + $0x78] sm:$0xff] }
 0x2af   :  { %v1407_v46 = vpop.eup %1406  ;;  %427 = vmatpush.msrb.mxu1 %v1769_v44 }
 0x2b0   :  { %v207_v47 = vmul.f32 %v1405_v39, %v206_v45  ;;  %v213_v48 = vmul.f32 %v1407_v46, %v201_v40  ;;  %vm219_vm13 = vweird.f32 %v1407_v46  ;;  %v1775_v45 = vld [vmem:[%s2134_s3 + $0x70] sm:$0xff] }
 0x2b1   :  { %vm220_vm15 = vmor %vm218_vm14, %vm219_vm13  ;;  %428 = vmatpush.msrb.mxu1 %v1775_v45 }
 0x2b2   :  { %v211_v50 = vsel %vm210_vm12, %v1405_v39, %v207_v47  ;;  %v214_v51 = vmul.f32 %v1407_v46, %v213_v48  ;;  %v1787_v47 = vld [vmem:[%s2134_s3 + $0x60] sm:$0xff] }
 0x2b3   :  { %v222_v52 = vmul.f32 %v211_v50, %v188_v22 }
 0x2b4   :  { %v215_v54 = vmul.f32 0.5, %v214_v51 }
 0x2b5   :  { %v225_v55 = vmul.f32 %v1380_v49, %v222_v52 }
 0x2b6   :  { %v216_v56 = vsub.f32 1.5, %v215_v54 }
 0x2b7   :  { %v228_v57 = vadd.f32 %v1381_v53, %v225_v55 }
 0x2b8   :  { %v217_v58 = vmul.f32 %v1407_v46, %v216_v56 }
 0x2b9   :  { %1265 = vmatmul.msk.f32.vlgmr.msra.gmra.mxu2 %vm119_vm1, %v228_v57 }
 0x2ba   :  { %v221_v59 = vsel %vm220_vm15, %v1407_v46, %v217_v58  ;;  %v1781_v46 = vld [vmem:[%s2134_s3 + $0x68] sm:$0xff] }
 0x2bb   :  { %v223_v60 = vmul.f32 %v221_v59, %v189_v27  ;;  %429 = vmatpush.msrb.mxu1 %v1781_v46 }
 0x2bd   :  { %v226_v61 = vmul.f32 %v1380_v49, %v223_v60  ;;  %430 = vmatpush.msrb.mxu1 %v1787_v47 }
 0x2bf   :  { %v229_v62 = vadd.f32 %v1381_v53, %v226_v61 }
 0x2c1   :  { %1266 = vmatmul.msk.f32.gmra.mxu2 %vm119_vm1, %v229_v62  ;;  %v494_v62 = vld [vmem:[%s2132_s1 + $0x40] sm:$0xff] }
 0x33c   :  { %v259_v0 = vpop.f32.mrf.mxu2 }
 0x33d   :  { %v260_v1 = vadd.f32 %v1382_v63, %v259_v0  ;;  %v492_v0 = vld [vmem:[%s2132_s1 + $0x30] sm:$0xff] }
 0x33f   :  { %267 = vrot.lane.b32.xlu0 %v260_v1, %s1481_s12 }
 0x344   :  { %v262_v2 = vpop.f32.mrf.mxu2 }
 0x345   :  { %v263_v3 = vadd.f32 %v1382_v63, %v262_v2  ;;  %v493_v63 = vld [vmem:[%s2132_s1 + $0x38] sm:$0xff] }
 0x347   :  { %269 = vrot.lane.b32.xlu2 %v263_v3, %s1481_s12  ;;  %337 = vrot.lane.b32.xlu0 %v1658_v5, %s1482_s17 }
 0x34f   :  { %339 = vrot.lane.b32.xlu2 %v1663_v6, %s1482_s17  ;;  %333 = vrot.lane.b32.xlu0 %v1687_v11, %s1482_s17 }
 0x357   :  { %335 = vrot.lane.b32.xlu2 %v1682_v10, %s1482_s17 }
 0x3a1   :  { %v270_v4 = vpop.permute.xlu2 %269 }
 0x3a2   :  { %1267 = vmatpush.msk.msrb.mxu0 %vm288_vm0, %v270_v4  ;;  %1352 = vmatpush.msk.msra.mxu3 %vm288_vm0, %v270_v4 }
 0x3a9   :  { %v1718_v16 = vpop.permute.xlu2 %339 }
 0x3b1   :  { %v268_v9 = vpop.permute.xlu0 %267  ;;  %v1720_v19 = vpop.permute.xlu2 %335 }
 0x3b2   :  { %306 = vmatpush.msrb.mxu0 %v268_v9  ;;  %1353 = vmatpush.msra.mxu3 %v268_v9 }
 0x3b3   :  { %1269 = vmatmul.msk.f32.vlgmr.msra.gmra.mxu3 %vm272_vm3, %v1672_v7  ;;  %1268 = vmatmul.msk.f32.vlgmr.msrb.gmra.mxu0 %vm272_vm3, %v1677_v8 }
 0x3b4   :  { %515 = vmatpush.msrb.mxu3 %v494_v62  ;;  %v580_v62 = vld [vmem:[%s2132_s1 + $0x50] sm:$0xff] }
 0x3b6   :  { %516 = vmatpush.msrb.mxu3 %v493_v63 }
 0x3b8   :  { %517 = vmatpush.msrb.mxu3 %v492_v0 }
 0x3b9   :  { %v1722_v20 = vpop.permute.xlu0 %337 }
 0x3bb   :  { %1270 = vmatmul.msk.f32.gmra.mxu3 %vm272_vm3, %v1700_v13 }
 0x3c1   :  { %v1797_v60 = vpop.permute.xlu0 %333 }
 0x3c3   :  { %1271 = vmatmul.msk.f32.gmra.mxu3 %vm272_vm3, %v1707_v14 }
 0x3cb   :  { %1272 = vmatmul.msk.f32.gmra.mxu3 %vm272_vm3, %v1714_v15 }
 0x430   :  { %v308_v31 = vpop.f32.mrf.mxu0 }
 0x431   :  { %v323_v33 = vmul.f32 %v308_v31, %v1687_v11  ;;  %v348_v61 = vmul.f32 %v1797_v60, %v308_v31 }
 0x436   :  { %v311_v17 = vpop.f32.mrf.mxu3 }
 0x437   :  { %v349_v22 = vmul.f32 %v1720_v19, %v311_v17  ;;  %v324_v32 = vmul.f32 %v311_v17, %v1682_v10 }
 0x43e   :  { %v314_v21 = vpop.f32.mrf.mxu3 }
 0x43f   :  { %v350_v23 = vmul.f32 %v1722_v20, %v314_v21  ;;  %v325_v30 = vmul.f32 %v314_v21, %v1658_v5 }
 0x441   :  { %v1363_v24 = vpack.i.bf16 %v349_v22, %v350_v23 }
 0x443   :  { %1364 = vrot.lane.b32.xlu0 %v1363_v24, %s1481_s12 }
 0x446   :  { %v317_v25 = vpop.f32.mrf.mxu3 }
 0x447   :  { %v326_v29 = vmul.f32 %v317_v25, %v1663_v6  ;;  %v351_v57 = vmul.f32 %v1718_v16, %v317_v25 }
 0x44e   :  { %v320_v27 = vpop.f32.mrf.mxu3 }
 0x44f   :  { %v327_v28 = vmul.f32 %v320_v27, %v1730_v26 }
 0x451   :  { %1273 = vmatpush.xpose.msk.msrb.mxu2 %vm119_vm1, %v327_v28 }
 0x455   :  { %1274 = vmatpush.xpose.msk.msrb.mxu2 %vm119_vm1, %v326_v29  ;;  %v491_v29 = vld [vmem:[%s2132_s1 + $0x28] sm:$0xff] }
 0x456   :  { %518 = vmatpush.msrb.mxu3 %v491_v29 }
 0x459   :  { %1275 = vmatpush.xpose.msk.msrb.mxu2 %vm119_vm1, %v325_v30 }
 0x45d   :  { %1276 = vmatpush.xpose.msk.msrb.mxu2 %vm119_vm1, %v324_v32  ;;  %v1383_v32 = vld [vmem:[%s2132_s1 + $0x48] ss:$0 sm:$0xff] }
 0x461   :  { %1277 = vmatpush.xpose.msk.msrb.mxu2 %vm119_vm1, %v323_v33 }
 0x464   :  { %1278 = vmatmul.msk.f32.vlgmr.msrb.gmra.mxu2 %vm119_vm1, %v260_v1 }
 0x46c   :  { %1279 = vmatmul.msk.f32.gmra.mxu2 %vm119_vm1, %v263_v3 }
 0x4b5   :  { %v1365_v3 = vpop.permute.xlu0 %1364 }
 0x4b6   :  { %v1366_v9 = vunpack.i.l.bf16 %v1365_v3  ;;  %v1367_v17 = vunpack.i.h.bf16 %v1365_v3 }
 0x4e7   :  { %v389_v35 = vpop.f32.mrf.mxu2 }
 0x4e8   :  { %v390_v36 = vadd.f32 %v389_v35, %v1747_v34 }
 0x4ea   :  { %v396_v37 = vsel %vm395_vm4, %v390_v36, -inf }
 0x4eb   :  { %397 = vmax.xlane.f32.xlu1 %v396_v37 }
 0x4ef   :  { %v392_v39 = vpop.f32.mrf.mxu2 }
 0x4f0   :  { %v393_v40 = vadd.f32 %v392_v39, %v1754_v38 }
 0x4f2   :  { %v400_v41 = vsel %vm399_vm5, %v393_v40, -inf }
 0x4f3   :  { %401 = vmax.xlane.f32.xlu1 %v400_v41 }
 0x50c   :  { %341 = vrot.lane.b32.xlu1 %v1730_v26, %s1482_s17 }
 0x55e   :  { %v398_v48 = vpop.xlane.xlu1 %397 }
 0x55f   :  { %v403_v49 = vsub.f32 %v390_v36, %v398_v48 }
 0x561   :  { %v405_v50 = vmul.f32 1.442695, %v403_v49 }
 0x563   :  { %1408 = vpow2.f32 %v405_v50 }
 0x566   :  { %v402_v51 = vpop.xlane.xlu1 %401 }
 0x567   :  { %v404_v52 = vsub.f32 %v393_v40, %v402_v51 }
 0x569   :  { %v1409_v53 = vpop.eup %1408  ;;  %v407_v54 = vmul.f32 1.442695, %v404_v52 }
 0x56a   :  { %1280 = vmatmul.msk.f32.vlgmr.msrb.gmra.mxu1 %vm395_vm4, %v1409_v53 }
 0x56b   :  { %1410 = vpow2.f32 %v407_v54 }
 0x571   :  { %v1411_v55 = vpop.eup %1410 }
 0x572   :  { %1281 = vmatmul.msk.f32.gmra.mxu1 %vm395_vm4, %v1411_v55 }
 0x57e   :  { %v1792_v56 = vpop.permute.xlu1 %341 }
 0x57f   :  { %v352_v58 = vmul.f32 %v1792_v56, %v320_v27 }
 0x581   :  { %v1358_v59 = vpack.i.bf16 %v351_v57, %v352_v58  ;;  %v583_v58 = vld [vmem:[%s2132_s1 + $0x68] sm:$0xff] }
 0x582   :  { %604 = vmatpush.msra.mxu0 %v583_v58  ;;  %v665_v58 = vld [vmem:[%s2132_s1 + $0xb8] sm:$0xff] }
 0x583   :  { %1359 = vrot.lane.b32.xlu2 %v1358_v59, %s1481_s12  ;;  %v582_v59 = vld [vmem:[%s2132_s1 + $0x60] sm:$0xff] }
 0x584   :  { %605 = vmatpush.msra.mxu0 %v582_v59  ;;  %v664_v59 = vld [vmem:[%s2132_s1 + $0xb0] sm:$0xff] }
 0x58b   :  { %447 = vrot.lane.b32.xlu2 %v348_v61, %s1481_s12  ;;  %v581_v61 = vld [vmem:[%s2132_s1 + $0x58] sm:$0xff] }
 0x58c   :  { %606 = vmatpush.msra.mxu0 %v581_v61  ;;  %v663_v61 = vld [vmem:[%s2132_s1 + $0xa8] sm:$0xff] }
 0x58e   :  { %607 = vmatpush.msra.mxu0 %v580_v62  ;;  %v662_v62 = vld [vmem:[%s2132_s1 + $0xa0] sm:$0xff] }
 0x5dd   :  { %v1360_v1 = vpop.permute.xlu2 %1359 }
 0x5de   :  { %v1361_v2 = vunpack.i.l.bf16 %v1360_v1  ;;  %v1362_v4 = vunpack.i.h.bf16 %v1360_v1 }
 0x5e0   :  { %479 = vmatpush.msra.mxu2 %v1361_v2 }
 0x5e2   :  { %480 = vmatpush.msra.mxu2 %v1362_v4 }
 0x5e4   :  { %481 = vmatpush.msra.mxu2 %v1366_v9 }
 0x5e5   :  { %v448_v21 = vpop.permute.xlu2 %447 }
 0x5e6   :  { %482 = vmatpush.msra.mxu2 %v1367_v17 }
 0x5e7   :  { %v432_v22 = vpop.f32.mrf.mxu1 }
 0x5e8   :  { %1412 = vrcp.f32 %v432_v22  ;;  %483 = vmatpush.msra.mxu2 %v448_v21 }
 0x5ee   :  { %v1413_v23 = vpop.eup %1412 }
 0x5ef   :  { %v440_v24 = vmul.f32 %v1413_v23, %v1409_v53  ;;  %v435_v25 = vpop.f32.mrf.mxu1 }
 0x5f0   :  { %1414 = vrcp.f32 %v435_v25 }
 0x5f1   :  { %1282 = vmatmul.msk.f32.vlgmr.msra.gmra.mxu2 %vm395_vm4, %v440_v24 }
 0x5f6   :  { %v1415_v27 = vpop.eup %1414 }
 0x5f7   :  { %v441_v28 = vmul.f32 %v1415_v27, %v1411_v55 }
 0x5f9   :  { %1283 = vmatmul.msk.f32.gmra.mxu2 %vm395_vm4, %v441_v28  ;;  %v1384_v28 = vld [vmem:[%s2132_s1 + $0x102] ss:$0 sm:$0xff] }
 0x674   :  { %v485_v30 = vpop.f32.mrf.mxu2 }
 0x675   :  { %1284 = vmatmul.msk.f32.vlgmr.msrb.gmra.mxu3 %vm119_vm1, %v485_v30 }
 0x67c   :  { %v488_v31 = vpop.f32.mrf.mxu2 }
 0x67d   :  { %1285 = vmatmul.msk.f32.gmra.mxu3 %vm119_vm1, %v488_v31 }
 0x6f8   :  { %v520_v33 = vpop.f32.mrf.mxu3 }
 0x6f9   :  { %v521_v35 = vadd.f32 %v1383_v32, %v520_v33 }
 0x6fb   :  { %v1821_v36 = vadd.f32 %v521_v35, %v1612_v12 }
 0x6fd   :  { %v530_v37 = vsel %vm119_vm1, %v1821_v36, 0.0 }
 0x6fe   :  { %531 = vadd.xlane.f32.xlu1 %v530_v37 }
 0x700   :  { %v523_v39 = vpop.f32.mrf.mxu3 }
 0x701   :  { %v524_v40 = vadd.f32 %v1383_v32, %v523_v39  ;;  %v1385_v32 = vld [vmem:[%s2132_s1 + $0x103] ss:$0 sm:$0xff] }
 0x703   :  { %v1826_v41 = vadd.f32 %v524_v40, %v1616_v18 }
 0x705   :  { %v533_v48 = vsel %vm123_vm2, %v1826_v41, 0.0 }
 0x706   :  { %534 = vadd.xlane.f32.xlu0 %v533_v48 }
 0x771   :  { %v532_v49 = vpop.xlane.xlu1 %531 }
 0x772   :  { %v536_v50 = vmul.f32 %v532_v49, %v1598_v43 }
 0x774   :  { %v538_v51 = vsub.f32 %v1821_v36, %v536_v50 }
 0x776   :  { %v540_v12 = vmul.f32 %v538_v51, %v538_v51 }
 0x778   :  { %v542_v52 = vsel %vm119_vm1, %v540_v12, 0.0 }
 0x779   :  { %543 = vadd.xlane.f32.xlu2 %v542_v52  ;;  %v535_v53 = vpop.xlane.xlu0 %534  ;;  %v671_v52 = vld [vmem:[%s2132_s1 + $0xe8] sm:$0xff] }
 0x77a   :  { %v537_v54 = vmul.f32 %v535_v53, %v1598_v43  ;;  %v670_v53 = vld [vmem:[%s2132_s1 + $0xe0] sm:$0xff] }
 0x77c   :  { %v539_v55 = vsub.f32 %v1826_v41, %v537_v54  ;;  %v669_v54 = vld [vmem:[%s2132_s1 + $0xd8] sm:$0xff] }
 0x77e   :  { %v541_v18 = vmul.f32 %v539_v55, %v539_v55 }
 0x780   :  { %v545_v57 = vsel %vm123_vm2, %v541_v18, 0.0  ;;  %v667_v18 = vld [vmem:[%s2132_s1 + $0xc8] sm:$0xff] }
 0x781   :  { %546 = vadd.xlane.f32.xlu1 %v545_v57  ;;  %v666_v57 = vld [vmem:[%s2132_s1 + $0xc0] sm:$0xff] }
 0x7ec   :  { %v544_v63 = vpop.xlane.xlu2 %543 }
 0x7ed   :  { %v548_v0 = vmul.f32 %v544_v63, %v1598_v43  ;;  %v661_v63 = vld [vmem:[%s2132_s1 + $0x98] sm:$0xff] }
 0x7ef   :  { %v550_v1 = vadd.f32 1e-05, %v548_v0  ;;  %v660_v0 = vld [vmem:[%s2132_s1 + $0x90] sm:$0xff] }
 0x7f1   :  { %1416 = vrsqrt.f32 %v550_v1  ;;  %vm558_vm7 = vweird.f32 %v550_v1 }
 0x7f4   :  { %v547_v2 = vpop.xlane.xlu1 %546 }
 0x7f5   :  { %v549_v3 = vmul.f32 %v547_v2, %v1598_v43  ;;  %v659_v2 = vld [vmem:[%s2132_s1 + $0x88] sm:$0xff] }
 0x7f7   :  { %v1417_v4 = vpop.eup %1416  ;;  %v551_v9 = vadd.f32 1e-05, %v549_v3  ;;  %v658_v3 = vld [vmem:[%s2132_s1 + $0x80] sm:$0xff] }
 0x7f8   :  { %v553_v17 = vmul.f32 %v1417_v4, %v550_v1  ;;  %vm559_vm6 = vweird.f32 %v1417_v4  ;;  %v1386_v1 = vld [vmem:[%s2132_s1 + $0x70] ss:$0 sm:$0xff] }
 0x7f9   :  { %1418 = vrsqrt.f32 %v551_v9  ;;  %vm560_vm8 = vmor %vm558_vm7, %vm559_vm6  ;;  %vm568_vm10 = vweird.f32 %v551_v9 }
 0x7fa   :  { %v554_v21 = vmul.f32 %v1417_v4, %v553_v17  ;;  %v657_v17 = vld [vmem:[%s2132_s1 + $0x78] sm:$0xff] }
 0x7fc   :  { %v555_v22 = vmul.f32 0.5, %v554_v21 }
 0x7fe   :  { %v556_v23 = vsub.f32 1.5, %v555_v22 }
 0x7ff   :  { %v1419_v24 = vpop.eup %1418 }
 0x800   :  { %v557_v25 = vmul.f32 %v1417_v4, %v556_v23  ;;  %v563_v27 = vmul.f32 %v1419_v24, %v551_v9  ;;  %vm569_vm9 = vweird.f32 %v1419_v24 }
 0x801   :  { %vm570_vm11 = vmor %vm568_vm10, %vm569_vm9 }
 0x802   :  { %v561_v29 = vsel %vm560_vm8, %v1417_v4, %v557_v25  ;;  %v564_v30 = vmul.f32 %v1419_v24, %v563_v27 }
 0x803   :  { %v572_v31 = vmul.f32 %v561_v29, %v538_v51  ;;  %v672_v51 = vld [vmem:[%s2132_s1 + $0xf0] sm:$0xff] }
 0x804   :  { %v565_v33 = vmul.f32 0.5, %v564_v30  ;;  %673 = vmatpush.msra.mxu1 %v672_v51 }
 0x805   :  { %v575_v35 = vmul.f32 %v1384_v28, %v572_v31 }
 0x806   :  { %v566_v37 = vsub.f32 1.5, %v565_v33  ;;  %674 = vmatpush.msra.mxu1 %v671_v52 }
 0x807   :  { %v578_v39 = vadd.f32 %v1385_v32, %v575_v35 }
 0x808   :  { %v567_v40 = vmul.f32 %v1419_v24, %v566_v37  ;;  %675 = vmatpush.msra.mxu1 %v670_v53 }
 0x809   :  { %1286 = vmatmul.msk.f32.vlgmr.msra.gmra.mxu0 %vm119_vm1, %v578_v39 }
 0x80a   :  { %v571_v48 = vsel %vm570_vm11, %v1419_v24, %v567_v40  ;;  %676 = vmatpush.msra.mxu1 %v669_v54 }
 0x80b   :  { %v573_v49 = vmul.f32 %v571_v48, %v539_v55  ;;  %v668_v55 = vld [vmem:[%s2132_s1 + $0xd0] sm:$0xff] }
 0x80c   :  { %677 = vmatpush.msra.mxu1 %v668_v55 }
 0x80d   :  { %v576_v50 = vmul.f32 %v1384_v28, %v573_v49 }
 0x80e   :  { %678 = vmatpush.msra.mxu1 %v667_v18 }
 0x80f   :  { %v579_v12 = vadd.f32 %v1385_v32, %v576_v50 }
 0x810   :  { %679 = vmatpush.msra.mxu1 %v666_v57 }
 0x811   :  { %1287 = vmatmul.msk.f32.gmra.mxu0 %vm119_vm1, %v579_v12 }
 0x812   :  { %680 = vmatpush.msra.mxu1 %v665_v58 }
 0x814   :  { %681 = vmatpush.msra.mxu1 %v664_v59 }
 0x816   :  { %682 = vmatpush.msra.mxu1 %v663_v61 }
 0x818   :  { %683 = vmatpush.msra.mxu1 %v662_v62 }
 0x81a   :  { %684 = vmatpush.msra.mxu1 %v661_v63 }
 0x81c   :  { %685 = vmatpush.msra.mxu1 %v660_v0  ;;  %v1387_v0 = vld [vmem:[%s2132_s1 + $0xf8] ss:$0 sm:$0xff] }
 0x81e   :  { %686 = vmatpush.msra.mxu1 %v659_v2 }
 0x820   :  { %687 = vmatpush.msra.mxu1 %v658_v3 }
 0x822   :  { %688 = vmatpush.msra.mxu1 %v657_v17 }
 0x886   :  { %v609_v4 = vpop.f32.mrf.mxu0 }
 0x887   :  { %v610_v9 = vadd.f32 %v1386_v1, %v609_v4 }
 0x889   :  { %v1288_v21 = vmul.f32 -1.702, %v610_v9 }
 0x88b   :  { %v619_v22 = vmul.f32 1.442695, %v1288_v21 }
 0x88d   :  { %1420 = vpow2.f32 %v619_v22 }
 0x88e   :  { %v612_v23 = vpop.f32.mrf.mxu0 }
 0x88f   :  { %v613_v24 = vadd.f32 %v1386_v1, %v612_v23 }
 0x891   :  { %v1289_v25 = vmul.f32 -1.702, %v613_v24 }
 0x893   :  { %v1421_v27 = vpop.eup %1420  ;;  %v621_v28 = vmul.f32 1.442695, %v1289_v25 }
 0x894   :  { %v623_v29 = vadd.f32 1.0, %v1421_v27 }
 0x895   :  { %1422 = vpow2.f32 %v621_v28 }
 0x896   :  { %1424 = vrcp.f32 %v623_v29  ;;  %v636_v37 = vand.u32 2147483648, %v623_v29  ;;  %v634_v40 = vand.u32 2147483647, %v623_v29  ;;  %vm630_vm13 = vweird.f32 %v623_v29 }
 0x898   :  { %v637_v50 = vor.u32 1.1754944e-38, %v636_v37  ;;  %vm635_vm15 = vcmp.eq.f32.partialorder %v634_v40, 8.507059e+37  ;;  %v1292_v37 = vld [vmem:[%s2132_s1 + $0x108] sm:$0xff] }
 0x89b   :  { %v1423_v30 = vpop.eup %1422 }
 0x89c   :  { %v1425_v31 = vpop.eup %1424  ;;  %v624_v32 = vadd.f32 1.0, %v1423_v30 }
 0x89d   :  { %v626_v33 = vmul.f32 %v1425_v31, %v623_v29  ;;  %vm631_vm12 = vweird.f32 %v1425_v31 }
 0x89e   :  { %1426 = vrcp.f32 %v624_v32  ;;  %vm632_vm14 = vmor %vm630_vm13, %vm631_vm12  ;;  %v651_v55 = vand.u32 2147483648, %v624_v32  ;;  %v649_v57 = vand.u32 2147483647, %v624_v32  ;;  %vm645_vm7 = vweird.f32 %v624_v32 }
 0x89f   :  { %v627_v35 = vsub.f32 1.0, %v626_v33  ;;  %v1294_v33 = vld [vmem:[%s2132_s1 + $0x118] sm:$0xff] }
 0x8a0   :  { %v652_v59 = vor.u32 1.1754944e-38, %v651_v55  ;;  %vm650_vm9 = vcmp.eq.f32.partialorder %v649_v57, 8.507059e+37 }
 0x8a1   :  { %v628_v39 = vmul.f32 %v1425_v31, %v627_v35  ;;  %v1293_v35 = vld [vmem:[%s2132_s1 + $0x110] sm:$0xff] }
 0x8a3   :  { %v629_v48 = vadd.f32 %v1425_v31, %v628_v39 }
 0x8a4   :  { %v1427_v49 = vpop.eup %1426 }
 0x8a5   :  { %v633_v12 = vsel %vm632_vm14, %v1425_v31, %v629_v48  ;;  %v641_v51 = vmul.f32 %v1427_v49, %v624_v32  ;;  %vm646_vm6 = vweird.f32 %v1427_v49  ;;  %v1295_v32 = vld [vmem:[%s2132_s1 + $0x120] sm:$0xff] }
 0x8a6   :  { %v638_v52 = vsel %vm635_vm15, %v637_v50, %v633_v12  ;;  %vm647_vm8 = vmor %vm645_vm7, %vm646_vm6  ;;  %779 = vmatpush.msrb.mxu2 %v1295_v32 }
 0x8a7   :  { %v655_v53 = vmul.f32 %v638_v52, %v610_v9  ;;  %v642_v54 = vsub.f32 1.0, %v641_v51 }
 0x8a8   :  { %780 = vmatpush.msrb.mxu2 %v1294_v33 }
 0x8a9   :  { %689 = vmatmul.f32.vlgmr.msra.gmra.mxu1 %v655_v53  ;;  %v643_v18 = vmul.f32 %v1427_v49, %v642_v54 }
 0x8aa   :  { %781 = vmatpush.msrb.mxu2 %v1293_v35 }
 0x8ab   :  { %v644_v58 = vadd.f32 %v1427_v49, %v643_v18 }
 0x8ac   :  { %782 = vmatpush.msrb.mxu2 %v1292_v37 }
 0x8ad   :  { %v648_v61 = vsel %vm647_vm8, %v1427_v49, %v644_v58  ;;  %v1389_v58 = vld [vmem:[%s2132_s1 + $0x209] ss:$0 sm:$0xff] }
 0x8ae   :  { %v653_v62 = vsel %vm650_vm9, %v652_v59, %v648_v61  ;;  %912 = vmatpush.msra.mxu2 %v1763_v42 }
 0x8af   :  { %v656_v63 = vmul.f32 %v653_v62, %v613_v24 }
 0x8b0   :  { %913 = vmatpush.msra.mxu2 %v1769_v44 }
 0x8b1   :  { %692 = vmatmul.f32.gmra.mxu1 %v656_v63 }
 0x8b2   :  { %914 = vmatpush.msra.mxu2 %v1775_v45 }
 0x8b4   :  { %915 = vmatpush.msra.mxu2 %v1781_v46  ;;  %v1388_v46 = vld [vmem:[%s2132_s1 + $0x208] ss:$0 sm:$0xff] }
 0x8b6   :  { %916 = vmatpush.msra.mxu2 %v1787_v47 }
 0x926   :  { %v690_v1 = vpop.f32.mrf.mxu1 }
 0x927   :  { %v696_v2 = vadd.f32 %v690_v1, %v1821_v36 }
 0x929   :  { %v1913_v3 = vadd.f32 %v1387_v0, %v696_v2 }
 0x92b   :  { %v705_v4 = vsel %vm119_vm1, %v1913_v3, 0.0 }
 0x92c   :  { %706 = vadd.xlane.f32.xlu0 %v705_v4 }
 0x92e   :  { %v693_v9 = vpop.f32.mrf.mxu1 }
 0x92f   :  { %v697_v17 = vadd.f32 %v693_v9, %v1826_v41 }
 0x931   :  { %v1918_v21 = vadd.f32 %v1387_v0, %v697_v17  ;;  %v1390_v17 = vld [vmem:[%s2132_s1 + $0x128] ss:$0 sm:$0xff] }
 0x933   :  { %v708_v22 = vsel %vm123_vm2, %v1918_v21, 0.0 }
 0x934   :  { %709 = vadd.xlane.f32.xlu2 %v708_v22 }
 0x99f   :  { %v707_v23 = vpop.xlane.xlu0 %706 }
 0x9a0   :  { %v711_v24 = vmul.f32 %v707_v23, %v1598_v43 }
 0x9a2   :  { %v713_v36 = vsub.f32 %v1913_v3, %v711_v24 }
 0x9a4   :  { %v715_v25 = vmul.f32 %v713_v36, %v713_v36 }
 0x9a6   :  { %v717_v27 = vsel %vm119_vm1, %v715_v25, 0.0 }
 0x9a7   :  { %v710_v28 = vpop.xlane.xlu2 %709  ;;  %718 = vadd.xlane.f32.xlu1 %v717_v27 }
 0x9a8   :  { %v712_v29 = vmul.f32 %v710_v28, %v1598_v43 }
 0x9aa   :  { %v714_v41 = vsub.f32 %v1918_v21, %v712_v29 }
 0x9ac   :  { %v716_v30 = vmul.f32 %v714_v41, %v714_v41 }
 0x9ae   :  { %v720_v31 = vsel %vm123_vm2, %v716_v30, 0.0 }
 0x9af   :  { %721 = vadd.xlane.f32.xlu0 %v720_v31 }
 0xa1a   :  { %v719_v39 = vpop.xlane.xlu1 %718 }
 0xa1b   :  { %v723_v40 = vmul.f32 %v719_v39, %v1598_v43 }
 0xa1d   :  { %v725_v48 = vadd.f32 1e-05, %v723_v40 }
 0xa1f   :  { %1428 = vrsqrt.f32 %v725_v48  ;;  %vm733_vm11 = vweird.f32 %v725_v48 }
 0xa22   :  { %v722_v49 = vpop.xlane.xlu0 %721 }
 0xa23   :  { %v724_v50 = vmul.f32 %v722_v49, %v1598_v43 }
 0xa25   :  { %v1429_v12 = vpop.eup %1428  ;;  %v726_v51 = vadd.f32 1e-05, %v724_v50 }
 0xa26   :  { %v728_v52 = vmul.f32 %v1429_v12, %v725_v48  ;;  %vm734_vm10 = vweird.f32 %v1429_v12 }
 0xa27   :  { %1430 = vrsqrt.f32 %v726_v51  ;;  %vm735_vm12 = vmor %vm733_vm11, %vm734_vm10  ;;  %vm743_vm14 = vweird.f32 %v726_v51 }
 0xa28   :  { %v729_v42 = vmul.f32 %v1429_v12, %v728_v52 }
 0xa2a   :  { %v730_v44 = vmul.f32 0.5, %v729_v42 }
 0xa2c   :  { %v731_v53 = vsub.f32 1.5, %v730_v44 }
 0xa2d   :  { %v1431_v54 = vpop.eup %1430 }
 0xa2e   :  { %v732_v55 = vmul.f32 %v1429_v12, %v731_v53  ;;  %v738_v45 = vmul.f32 %v1431_v54, %v726_v51  ;;  %vm744_vm13 = vweird.f32 %v1431_v54 }
 0xa2f   :  { %vm745_vm15 = vmor %vm743_vm14, %vm744_vm13 }
 0xa30   :  { %v736_v47 = vsel %vm735_vm12, %v1429_v12, %v732_v55  ;;  %v739_v18 = vmul.f32 %v1431_v54, %v738_v45  ;;  %v1319_v55 = vld [vmem:[%s2132_s1 + $0x148] sm:$0xff]  ;;  %v1318_v45 = vld [vmem:[%s2132_s1 + $0x140] sm:$0xff] }
 0xa31   :  { %v747_v57 = vmul.f32 %v736_v47, %v713_v36 }
 0xa32   :  { %v740_v59 = vmul.f32 0.5, %v739_v18 }
 0xa33   :  { %v750_v61 = vmul.f32 %v1388_v46, %v747_v57 }
 0xa34   :  { %v741_v62 = vsub.f32 1.5, %v740_v59 }
 0xa35   :  { %v753_v63 = vadd.f32 %v1389_v58, %v750_v61 }
 0xa36   :  { %v742_v0 = vmul.f32 %v1431_v54, %v741_v62  ;;  %v1316_v62 = vld [vmem:[%s2132_s1 + $0x130] sm:$0xff] }
 0xa37   :  { %1297 = vmatmul.msk.f32.vlgmr.msrb.gmra.mxu2 %vm119_vm1, %v753_v63 }
 0xa38   :  { %v746_v1 = vsel %vm745_vm15, %v1431_v54, %v742_v0 }
 0xa39   :  { %v748_v2 = vmul.f32 %v746_v1, %v714_v41  ;;  %v1391_v1 = vld [vmem:[%s2132_s1 + $0x150] ss:$0 sm:$0xff] }
 0xa3b   :  { %v751_v4 = vmul.f32 %v1388_v46, %v748_v2  ;;  %v1317_v46 = vld [vmem:[%s2132_s1 + $0x138] sm:$0xff] }
 0xa3d   :  { %v754_v9 = vadd.f32 %v1389_v58, %v751_v4 }
 0xa3f   :  { %1298 = vmatmul.msk.f32.gmra.mxu2 %vm119_vm1, %v754_v9 }
 0xaba   :  { %v784_v22 = vpop.f32.mrf.mxu2 }
 0xabb   :  { %v785_v23 = vadd.f32 %v1390_v17, %v784_v22 }
 0xabd   :  { %792 = vrot.lane.b32.xlu1 %v785_v23, %s1481_s12 }
 0xac2   :  { %v787_v24 = vpop.f32.mrf.mxu2 }
 0xac3   :  { %v788_v36 = vadd.f32 %v1390_v17, %v787_v24 }
 0xac5   :  { %794 = vrot.lane.b32.xlu2 %v788_v36, %s1481_s12 }
 0xb1f   :  { %v795_v25 = vpop.permute.xlu2 %794 }
 0xb20   :  { %1299 = vmatpush.msk.msra.mxu3 %vm288_vm0, %v795_v25 }
 0xb2f   :  { %v793_v27 = vpop.permute.xlu1 %792 }
 0xb30   :  { %814 = vmatpush.msra.mxu3 %v793_v27 }
 0xb31   :  { %1300 = vmatmul.msk.f32.vlgmr.msra.gmra.mxu3 %vm272_vm3, %v1677_v8 }
 0xb39   :  { %1301 = vmatmul.msk.f32.gmra.mxu3 %vm272_vm3, %v1672_v7 }
 0xb41   :  { %1302 = vmatmul.msk.f32.gmra.mxu3 %vm272_vm3, %v1700_v13 }
 0xb49   :  { %1303 = vmatmul.msk.f32.gmra.mxu3 %vm272_vm3, %v1707_v14 }
 0xb51   :  { %1304 = vmatmul.msk.f32.gmra.mxu3 %vm272_vm3, %v1714_v15 }
 0xbb4   :  { %v816_v28 = vpop.f32.mrf.mxu3 }
 0xbb5   :  { %v836_v29 = vmul.f32 %v816_v28, %v1797_v60 }
 0xbb7   :  { %933 = vrot.lane.b32.xlu1 %v836_v29, %s1481_s12 }
 0xbbc   :  { %v819_v41 = vpop.f32.mrf.mxu3 }
 0xbbd   :  { %v837_v8 = vmul.f32 %v819_v41, %v1720_v19  ;;  %v832_v19 = vmul.f32 %v819_v41, %v1682_v10 }
 0xbc4   :  { %v822_v30 = vpop.f32.mrf.mxu3 }
 0xbc5   :  { %v838_v7 = vmul.f32 %v822_v30, %v1722_v20  ;;  %v833_v60 = vmul.f32 %v822_v30, %v1658_v5  ;;  %v831_v20 = vmul.f32 %v816_v28, %v1687_v11 }
 0xbc7   :  { %v1373_v31 = vpack.i.bf16 %v837_v8, %v838_v7 }
 0xbc9   :  { %1374 = vrot.lane.b32.xlu2 %v1373_v31, %s1481_s12 }
 0xbcc   :  { %v825_v13 = vpop.f32.mrf.mxu3 }
 0xbcd   :  { %v834_v15 = vmul.f32 %v825_v13, %v1663_v6  ;;  %v839_v37 = vmul.f32 %v825_v13, %v1718_v16  ;;  %v1327_v13 = vld [vmem:[%s2132_s1 + $0x168] sm:$0xff] }
 0xbd4   :  { %v828_v32 = vpop.f32.mrf.mxu3 }
 0xbd5   :  { %v835_v14 = vmul.f32 %v828_v32, %v1730_v26  ;;  %v840_v11 = vmul.f32 %v828_v32, %v1792_v56  ;;  %v1326_v32 = vld [vmem:[%s2132_s1 + $0x160] sm:$0xff] }
 0xbd7   :  { %1305 = vmatpush.xpose.msk.msrb.mxu0 %vm119_vm1, %v835_v14  ;;  %v1368_v39 = vpack.i.bf16 %v839_v37, %v840_v11  ;;  %v1325_v14 = vld [vmem:[%s2132_s1 + $0x158] sm:$0xff] }
 0xbdb   :  { %1306 = vmatpush.xpose.msk.msrb.mxu0 %vm119_vm1, %v834_v15 }
 0xbdf   :  { %1307 = vmatpush.xpose.msk.msrb.mxu0 %vm119_vm1, %v833_v60 }
 0xbe3   :  { %1308 = vmatpush.xpose.msk.msrb.mxu0 %vm119_vm1, %v832_v19 }
 0xbe7   :  { %1309 = vmatpush.xpose.msk.msrb.mxu0 %vm119_vm1, %v831_v20 }
 0xbea   :  { %1310 = vmatmul.msk.f32.vlgmr.msrb.gmra.mxu0 %vm119_vm1, %v785_v23 }
 0xbeb   :  { %1001 = vmatpush.msra.mxu0 %v1319_v55  ;;  %v1349_v55 = vld [vmem:[%s2132_s1 + $0x1f8] sm:$0xff] }
 0xbec   :  { %1159 = vmatpush.msrb.mxu3 %v1349_v55 }
 0xbed   :  { %1002 = vmatpush.msra.mxu0 %v1318_v45  ;;  %v1348_v45 = vld [vmem:[%s2132_s1 + $0x1f0] sm:$0xff] }
 0xbee   :  { %1160 = vmatpush.msrb.mxu3 %v1348_v45 }
 0xbef   :  { %1003 = vmatpush.msra.mxu0 %v1317_v46  ;;  %v1347_v46 = vld [vmem:[%s2132_s1 + $0x1e8] sm:$0xff] }
 0xbf0   :  { %1161 = vmatpush.msrb.mxu3 %v1347_v46  ;;  %v1220_v46 = vld [vmem:[%s2133_s2 + $0xe0] sm:$0xff] }
 0xbf1   :  { %1004 = vmatpush.msra.mxu0 %v1316_v62  ;;  %v1340_v62 = vld [vmem:[%s2132_s1 + $0x1b0] sm:$0xff] }
 0xbf2   :  { %1311 = vmatmul.msk.f32.gmra.mxu0 %vm119_vm1, %v788_v36 }
 0xc23   :  { %v1375_v40 = vpop.permute.xlu2 %1374 }
 0xc24   :  { %v1376_v44 = vunpack.i.l.bf16 %v1375_v40  ;;  %v1377_v53 = vunpack.i.h.bf16 %v1375_v40 }
 0xc29   :  { %v934_v54 = vpop.permute.xlu1 %933 }
 0xc67   :  { %v877_v26 = vpop.f32.mrf.mxu0 }
 0xc68   :  { %v878_v6 = vadd.f32 %v877_v26, %v1747_v34 }
 0xc6a   :  { %v883_v33 = vsel %vm395_vm4, %v878_v6, -inf }
 0xc6b   :  { %884 = vmax.xlane.f32.xlu0 %v883_v33 }
 0xc6f   :  { %v880_v5 = vpop.f32.mrf.mxu0 }
 0xc70   :  { %v881_v35 = vadd.f32 %v880_v5, %v1754_v38 }
 0xc72   :  { %v886_v10 = vsel %vm399_vm5, %v881_v35, -inf }
 0xc73   :  { %887 = vmax.xlane.f32.xlu2 %v886_v10 }
 0xc7f   :  { %1369 = vrot.lane.b32.xlu0 %v1368_v39, %s1481_s12 }
 0xcde   :  { %v885_v48 = vpop.xlane.xlu0 %884 }
 0xcdf   :  { %v889_v49 = vsub.f32 %v878_v6, %v885_v48  ;;  %v1392_v48 = vld [vmem:[%s2132_s1 + $0x20a] ss:$0 sm:$0xff] }
 0xce1   :  { %v891_v34 = vmul.f32 1.442695, %v889_v49 }
 0xce3   :  { %1432 = vpow2.f32 %v891_v34 }
 0xce6   :  { %v888_v50 = vpop.xlane.xlu2 %887 }
 0xce7   :  { %v890_v12 = vsub.f32 %v881_v35, %v888_v50 }
 0xce9   :  { %v1433_v51 = vpop.eup %1432  ;;  %v893_v52 = vmul.f32 1.442695, %v890_v12  ;;  %v1393_v12 = vld [vmem:[%s2132_s1 + $0x20b] ss:$0 sm:$0xff] }
 0xcea   :  { %1312 = vmatmul.msk.f32.vlgmr.msra.gmra.mxu2 %vm395_vm4, %v1433_v51 }
 0xceb   :  { %1434 = vpow2.f32 %v893_v52 }
 0xcf1   :  { %v1435_v38 = vpop.eup %1434  ;;  %v1370_v42 = vpop.permute.xlu0 %1369 }
 0xcf2   :  { %v1371_v56 = vunpack.i.l.bf16 %v1370_v42  ;;  %1313 = vmatmul.msk.f32.gmra.mxu2 %vm395_vm4, %v1435_v38  ;;  %v1372_v16 = vunpack.i.h.bf16 %v1370_v42 }
 0xcf4   :  { %965 = vmatpush.msrb.mxu1 %v1371_v56 }
 0xcf6   :  { %966 = vmatpush.msrb.mxu1 %v1372_v16 }
 0xcf8   :  { %967 = vmatpush.msrb.mxu1 %v1376_v44 }
 0xcfa   :  { %968 = vmatpush.msrb.mxu1 %v1377_v53 }
 0xcfc   :  { %969 = vmatpush.msrb.mxu1 %v934_v54 }
 0xd6d   :  { %v918_v47 = vpop.f32.mrf.mxu2 }
 0xd6e   :  { %1436 = vrcp.f32 %v918_v47  ;;  %v1346_v47 = vld [vmem:[%s2132_s1 + $0x1e0] sm:$0xff] }
 0xd6f   :  { %1162 = vmatpush.msrb.mxu3 %v1346_v47  ;;  %v1219_v47 = vld [vmem:[%s2133_s2 + $0xd8] sm:$0xff] }
 0xd74   :  { %v1437_v18 = vpop.eup %1436 }
 0xd75   :  { %v926_v57 = vmul.f32 %v1437_v18, %v1433_v51  ;;  %v921_v58 = vpop.f32.mrf.mxu2  ;;  %v1345_v18 = vld [vmem:[%s2132_s1 + $0x1d8] sm:$0xff] }
 0xd76   :  { %1438 = vrcp.f32 %v921_v58  ;;  %1163 = vmatpush.msrb.mxu3 %v1345_v18  ;;  %v1343_v58 = vld [vmem:[%s2132_s1 + $0x1c8] sm:$0xff]  ;;  %v1218_v18 = vld [vmem:[%s2133_s2 + $0xd0] sm:$0xff] }
 0xd77   :  { %1314 = vmatmul.msk.f32.vlgmr.msrb.gmra.mxu1 %vm395_vm4, %v926_v57  ;;  %v1344_v57 = vld [vmem:[%s2132_s1 + $0x1d0] sm:$0xff] }
 0xd78   :  { %1164 = vmatpush.msrb.mxu3 %v1344_v57 }
 0xd7a   :  { %1165 = vmatpush.msrb.mxu3 %v1343_v58 }
 0xd7c   :  { %v1439_v59 = vpop.eup %1438 }
 0xd7d   :  { %v927_v61 = vmul.f32 %v1439_v59, %v1435_v38  ;;  %v1342_v59 = vld [vmem:[%s2132_s1 + $0x1c0] sm:$0xff] }
 0xd7e   :  { %1166 = vmatpush.msrb.mxu3 %v1342_v59 }
 0xd7f   :  { %1315 = vmatmul.msk.f32.gmra.mxu1 %vm395_vm4, %v927_v61  ;;  %v1341_v61 = vld [vmem:[%s2132_s1 + $0x1b8] sm:$0xff] }
 0xd80   :  { %1167 = vmatpush.msrb.mxu3 %v1341_v61 }
 0xd82   :  { %1168 = vmatpush.msrb.mxu3 %v1340_v62 }
 0xdf4   :  { %v971_v63 = vpop.f32.mrf.mxu1 }
 0xdf5   :  { %1321 = vmatmul.msk.f32.vlgmr.msra.gmra.mxu0 %vm119_vm1, %v971_v63  ;;  %v1339_v63 = vld [vmem:[%s2132_s1 + $0x1a8] sm:$0xff] }
 0xdf6   :  { %1169 = vmatpush.msrb.mxu3 %v1339_v63 }
 0xdfc   :  { %v974_v0 = vpop.f32.mrf.mxu1 }
 0xdfd   :  { %1322 = vmatmul.msk.f32.gmra.mxu0 %vm119_vm1, %v974_v0  ;;  %v1338_v0 = vld [vmem:[%s2132_s1 + $0x1a0] sm:$0xff] }
 0xdfe   :  { %1170 = vmatpush.msrb.mxu3 %v1338_v0 }
 0xe72   :  { %v1006_v2 = vpop.f32.mrf.mxu0 }
 0xe73   :  { %v1007_v4 = vadd.f32 %v1391_v1, %v1006_v2  ;;  %v1394_v2 = vld [vmem:[%s2132_s1 + $0x178] ss:$0 sm:$0xff] }
 0xe75   :  { %v2017_v9 = vadd.f32 %v1007_v4, %v1913_v3  ;;  %v1336_v4 = vld [vmem:[%s2132_s1 + $0x190] sm:$0xff] }
 0xe77   :  { %v1016_v17 = vsel %vm119_vm1, %v2017_v9, 0.0 }
 0xe78   :  { %1017 = vadd.xlane.f32.xlu0 %v1016_v17  ;;  %v1335_v17 = vld [vmem:[%s2132_s1 + $0x188] sm:$0xff] }
 0xe7a   :  { %v1009_v22 = vpop.f32.mrf.mxu0 }
 0xe7b   :  { %v1010_v23 = vadd.f32 %v1391_v1, %v1009_v22  ;;  %v1337_v1 = vld [vmem:[%s2132_s1 + $0x198] sm:$0xff] }
 0xe7c   :  { %1171 = vmatpush.msrb.mxu3 %v1337_v1 }
 0xe7d   :  { %v1013_v24 = vadd.f32 %v1010_v23, %v1918_v21  ;;  %v1328_v21 = vld [vmem:[%s2132_s1 + $0x170] sm:$0xff] }
 0xe7e   :  { %1090 = vmatpush.msrb.mxu2 %v1328_v21  ;;  %1172 = vmatpush.msrb.mxu3 %v1336_v4  ;;  %v1396_v4 = vld [vmem:[%s2133_s2 + $0xca] ss:$0 sm:$0xff] }
 0xe7f   :  { %v1019_v36 = vsel %vm123_vm2, %v1013_v24, 0.0 }
 0xe80   :  { %1020 = vadd.xlane.f32.xlu2 %v1019_v36  ;;  %1091 = vmatpush.msrb.mxu2 %v1327_v13 }
 0xe81   :  { %1173 = vmatpush.msrb.mxu3 %v1335_v17 }
 0xe82   :  { %1092 = vmatpush.msrb.mxu2 %v1326_v32 }
 0xe84   :  { %1093 = vmatpush.msrb.mxu2 %v1325_v14 }
 0xeeb   :  { %v1018_v25 = vpop.xlane.xlu0 %1017 }
 0xeec   :  { %v1022_v27 = vmul.f32 %v1018_v25, %v1598_v43 }
 0xeee   :  { %v1024_v28 = vsub.f32 %v2017_v9, %v1022_v27 }
 0xef0   :  { %v1026_v29 = vmul.f32 %v1024_v28, %v1024_v28 }
 0xef2   :  { %v1028_v3 = vsel %vm119_vm1, %v1026_v29, 0.0 }
 0xef3   :  { %1029 = vadd.xlane.f32.xlu1 %v1028_v3  ;;  %v1021_v41 = vpop.xlane.xlu2 %1020 }
 0xef4   :  { %v1023_v30 = vmul.f32 %v1021_v41, %v1598_v43 }
 0xef6   :  { %v1025_v8 = vsub.f32 %v1013_v24, %v1023_v30  ;;  %v1334_v24 = vld [vmem:[%s2132_s1 + $0x180] sm:$0xff] }
 0xef7   :  { %1174 = vmatpush.msrb.mxu3 %v1334_v24 }
 0xef8   :  { %v1027_v7 = vmul.f32 %v1025_v8, %v1025_v8 }
 0xefa   :  { %v1031_v31 = vsel %vm123_vm2, %v1027_v7, 0.0 }
 0xefb   :  { %1032 = vadd.xlane.f32.xlu0 %v1031_v31 }
 0xf66   :  { %v1030_v15 = vpop.xlane.xlu1 %1029 }
 0xf67   :  { %v1034_v60 = vmul.f32 %v1030_v15, %v1598_v43 }
 0xf69   :  { %v1036_v19 = vadd.f32 1e-05, %v1034_v60 }
 0xf6b   :  { %1440 = vrsqrt.f32 %v1036_v19  ;;  %vm1044_vm3 = vweird.f32 %v1036_v19 }
 0xf6e   :  { %v1033_v20 = vpop.xlane.xlu0 %1032 }
 0xf6f   :  { %v1035_v26 = vmul.f32 %v1033_v20, %v1598_v43 }
 0xf71   :  { %v1441_v6 = vpop.eup %1440  ;;  %v1037_v33 = vadd.f32 1e-05, %v1035_v26 }
 0xf72   :  { %v1039_v5 = vmul.f32 %v1441_v6, %v1036_v19  ;;  %vm1045_vm0 = vweird.f32 %v1441_v6 }
 0xf73   :  { %1442 = vrsqrt.f32 %v1037_v33  ;;  %vm1046_vm4 = vmor %vm1044_vm3, %vm1045_vm0  ;;  %vm1054_vm6 = vweird.f32 %v1037_v33  ;;  %vm1188_vm0 = vcmask 1040384  }
 0xf74   :  { %v1040_v35 = vmul.f32 %v1441_v6, %v1039_v5 }
 0xf76   :  { %v1041_v10 = vmul.f32 0.5, %v1040_v35 }
 0xf78   :  { %v1042_v11 = vsub.f32 1.5, %v1041_v10 }
 0xf79   :  { %v1443_v37 = vpop.eup %1442 }
 0xf7a   :  { %v1043_v39 = vmul.f32 %v1441_v6, %v1042_v11  ;;  %v1049_v40 = vmul.f32 %v1443_v37, %v1037_v33  ;;  %vm1055_vm5 = vweird.f32 %v1443_v37 }
 0xf7b   :  { %vm1056_vm7 = vmor %vm1054_vm6, %vm1055_vm5  ;;  %vm1245_vm5 = vcmask 123904  }
 0xf7c   :  { %v1047_v49 = vsel %vm1046_vm4, %v1441_v6, %v1043_v39  ;;  %v1050_v34 = vmul.f32 %v1443_v37, %v1049_v40 }
 0xf7d   :  { %v1058_v50 = vmul.f32 %v1047_v49, %v1024_v28 }
 0xf7e   :  { %v1051_v51 = vmul.f32 0.5, %v1050_v34 }
 0xf7f   :  { %v1061_v52 = vmul.f32 %v1392_v48, %v1058_v50  ;;  %v1395_v50 = vld [vmem:[%s2132_s1 + $0x200] ss:$0 sm:$0xff] }
 0xf80   :  { %v1052_v38 = vsub.f32 1.5, %v1051_v51 }
 0xf81   :  { %v1064_v42 = vadd.f32 %v1393_v12, %v1061_v52 }
 0xf82   :  { %v1053_v56 = vmul.f32 %v1443_v37, %v1052_v38 }
 0xf83   :  { %1330 = vmatmul.msk.f32.vlgmr.msrb.gmra.mxu2 %vm119_vm1, %v1064_v42 }
 0xf84   :  { %v1057_v16 = vsel %vm1056_vm7, %v1443_v37, %v1053_v56 }
 0xf85   :  { %v1059_v44 = vmul.f32 %v1057_v16, %v1025_v8 }
 0xf87   :  { %v1062_v53 = vmul.f32 %v1392_v48, %v1059_v44 }
 0xf89   :  { %v1065_v54 = vadd.f32 %v1393_v12, %v1062_v53 }
 0xf8b   :  { %1331 = vmatmul.msk.f32.gmra.mxu2 %vm119_vm1, %v1065_v54 }
0x1006   :  { %v1095_v22 = vpop.f32.mrf.mxu2 }
0x1007   :  { %v1096_v23 = vadd.f32 %v1394_v2, %v1095_v22 }
0x1009   :  { %v1332_v36 = vmul.f32 -1.702, %v1096_v23 }
0x100b   :  { %v1105_v25 = vmul.f32 1.442695, %v1332_v36 }
0x100d   :  { %1444 = vpow2.f32 %v1105_v25 }
0x100e   :  { %v1098_v27 = vpop.f32.mrf.mxu2 }
0x100f   :  { %v1099_v28 = vadd.f32 %v1394_v2, %v1098_v27 }
0x1011   :  { %v1333_v29 = vmul.f32 -1.702, %v1099_v28 }
0x1013   :  { %v1445_v3 = vpop.eup %1444  ;;  %v1107_v41 = vmul.f32 1.442695, %v1333_v29 }
0x1014   :  { %v1109_v30 = vadd.f32 1.0, %v1445_v3 }
0x1015   :  { %1446 = vpow2.f32 %v1107_v41 }
0x1016   :  { %1448 = vrcp.f32 %v1109_v30  ;;  %v1122_v32 = vand.u32 2147483648, %v1109_v30  ;;  %v1120_v15 = vand.u32 2147483647, %v1109_v30  ;;  %vm1116_vm9 = vweird.f32 %v1109_v30 }
0x1018   :  { %v1123_v20 = vor.u32 1.1754944e-38, %v1122_v32  ;;  %vm1121_vm11 = vcmp.eq.f32.partialorder %v1120_v15, 8.507059e+37 }
0x101b   :  { %v1447_v8 = vpop.eup %1446 }
0x101c   :  { %v1449_v7 = vpop.eup %1448  ;;  %v1110_v31 = vadd.f32 1.0, %v1447_v8 }
0x101d   :  { %v1112_v21 = vmul.f32 %v1449_v7, %v1109_v30  ;;  %vm1117_vm8 = vweird.f32 %v1449_v7 }
0x101e   :  { %1450 = vrcp.f32 %v1110_v31  ;;  %vm1118_vm10 = vmor %vm1116_vm9, %vm1117_vm8  ;;  %v1137_v10 = vand.u32 2147483648, %v1110_v31  ;;  %v1135_v37 = vand.u32 2147483647, %v1110_v31  ;;  %vm1131_vm13 = vweird.f32 %v1110_v31 }
0x101f   :  { %v1113_v13 = vsub.f32 1.0, %v1112_v21 }
0x1020   :  { %v1138_v40 = vor.u32 1.1754944e-38, %v1137_v10  ;;  %vm1136_vm15 = vcmp.eq.f32.partialorder %v1135_v37, 8.507059e+37 }
0x1021   :  { %v1114_v14 = vmul.f32 %v1449_v7, %v1113_v13 }
0x1023   :  { %v1115_v60 = vadd.f32 %v1449_v7, %v1114_v14 }
0x1024   :  { %v1451_v19 = vpop.eup %1450 }
0x1025   :  { %v1119_v26 = vsel %vm1118_vm10, %v1449_v7, %v1115_v60  ;;  %v1127_v6 = vmul.f32 %v1451_v19, %v1110_v31  ;;  %vm1132_vm12 = vweird.f32 %v1451_v19 }
0x1026   :  { %v1124_v33 = vsel %vm1121_vm11, %v1123_v20, %v1119_v26  ;;  %vm1133_vm14 = vmor %vm1131_vm13, %vm1132_vm12 }
0x1027   :  { %v1141_v5 = vmul.f32 %v1124_v33, %v1096_v23  ;;  %v1128_v35 = vsub.f32 1.0, %v1127_v6 }
0x1029   :  { %1175 = vmatmul.f32.vlgmr.msrb.gmra.mxu3 %v1141_v5  ;;  %v1129_v11 = vmul.f32 %v1451_v19, %v1128_v35 }
0x102b   :  { %v1130_v39 = vadd.f32 %v1451_v19, %v1129_v11 }
0x102d   :  { %v1134_v48 = vsel %vm1133_vm14, %v1451_v19, %v1130_v39 }
0x102e   :  { %v1139_v49 = vsel %vm1136_vm15, %v1138_v40, %v1134_v48 }
0x102f   :  { %v1142_v34 = vmul.f32 %v1139_v49, %v1099_v28 }
0x1031   :  { %1178 = vmatmul.f32.gmra.mxu3 %v1142_v34 }
0x10ac   :  { %v1176_v12 = vpop.f32.mrf.mxu3 }
0x10ad   :  { %v1181_v51 = vadd.f32 %v1176_v12, %v2017_v9  ;;  %v1221_v9 = vld [vmem:[%s2133_s2 + $0xe8] sm:$0xff] }
0x10ae   :  { %1237 = vmatpush.msra.mxu1 %v1221_v9 }
0x10af   :  { %v1184_v52 = vadd.f32 %v1395_v50, %v1181_v51 }
0x10b0   :  { %1238 = vmatpush.msra.mxu1 %v1220_v46 }
0x10b1   :  { %v1186_v38 = vrot.slane %v1184_v52, 4 }
0x10b2   :  { %1239 = vmatpush.msra.mxu1 %v1219_v47 }
0x10b3   :  { %v1189_v42 = vsel %vm1188_vm0, %v1184_v52, %v1186_v38 }
0x10b4   :  { %v1179_v56 = vpop.f32.mrf.mxu3  ;;  %v1192_v16 = vsel %vm123_vm2, %v1189_v42, 0.0  ;;  %1240 = vmatpush.msra.mxu1 %v1218_v18 }
0x10b5   :  { %1193 = vadd.xlane.f32.xlu1 %v1192_v16 }
0x1128   :  { %v1194_v44 = vpop.xlane.xlu1 %1193 }
0x1129   :  { %v1195_v53 = vmul.f32 %v1194_v44, %v1598_v43 }
0x112b   :  { %v1196_v54 = vsub.f32 %v1189_v42, %v1195_v53 }
0x112d   :  { %v1197_v55 = vmul.f32 %v1196_v54, %v1196_v54 }
0x112f   :  { %v1198_v45 = vsel %vm123_vm2, %v1197_v55, 0.0 }
0x1130   :  { %1199 = vadd.xlane.f32.xlu2 %v1198_v45 }
0x11a3   :  { %v1200_v57 = vpop.xlane.xlu2 %1199 }
0x11a4   :  { %v1201_v58 = vmul.f32 %v1200_v57, %v1598_v43  ;;  %v1397_v43 = vld [vmem:[%s2133_s2 + $0xcb] ss:$0 sm:$0xff] }
0x11a6   :  { %v1202_v59 = vadd.f32 1e-05, %v1201_v58 }
0x11a8   :  { %1452 = vrsqrt.f32 %v1202_v59  ;;  %vm1209_vm3 = vweird.f32 %v1202_v59 }
0x11ae   :  { %v1453_v61 = vpop.eup %1452 }
0x11af   :  { %v1204_v62 = vmul.f32 %v1453_v61, %v1202_v59  ;;  %vm1210_vm2 = vweird.f32 %v1453_v61 }
0x11b0   :  { %vm1211_vm4 = vmor %vm1209_vm3, %vm1210_vm2 }
0x11b1   :  { %v1205_v63 = vmul.f32 %v1453_v61, %v1204_v62 }
0x11b3   :  { %v1206_v0 = vmul.f32 0.5, %v1205_v63 }
0x11b5   :  { %v1207_v1 = vsub.f32 1.5, %v1206_v0 }
0x11b7   :  { %v1208_v2 = vmul.f32 %v1453_v61, %v1207_v1 }
0x11b9   :  { %v1212_v17 = vsel %vm1211_vm4, %v1453_v61, %v1208_v2 }
0x11ba   :  { %v1213_v22 = vmul.f32 %v1212_v17, %v1196_v54 }
0x11bc   :  { %v1215_v23 = vmul.f32 %v1396_v4, %v1213_v22 }
0x11be   :  { %v1217_v24 = vadd.f32 %v1397_v43, %v1215_v23 }
0x11c0   :  { %1351 = vmatmul.msk.f32.vlgmr.msra.gmra.mxu1 %vm119_vm1, %v1217_v24 }
0x123d   :  { %v1242_v36 = vpop.f32.mrf.mxu1 }
0x123e   :  { %1246 = vst.msk [vmem:[#allocation2] sm:$0x3] %vm1245_vm5, %v1242_v36 }
0x123f   :  { %1257 = dma.vmem_to_hbm [thread:$0]  %s1253_s24, 32, %s1255_s27, [#allocation3]  }
0x1240   :  { %1478 = dma.done.wait [#allocation3], 32  }
0x1241   :  { %1479 = vsyncadd [#allocation3], 4294967264 }
0x1242   :  { %1262 = vsyncpa [#allocation3], 1 }

</bundles_post_ra>
